<compile_context>
chip_gen: v7x
topology: tpu7x:2x2x1
jax: 0.10.0
libtpu: 0.0.40
codegen_flags: <defaults>
</compile_context>

<pallas_src>
import functools

import jax
import jax.numpy as jnp
from jax import lax
from jax.experimental import pallas as pl
from jax.experimental.pallas import tpu as pltpu


# ---------------------------------------------------------------------------
# Helpers
# ---------------------------------------------------------------------------
def _norm_pad(padding):
    if isinstance(padding, int):
        return (padding, padding, padding, padding)
    return tuple(padding)


def _apply_act(x, act):
    if act == "relu":
        return jnp.maximum(x, 0.0)
    if act == "tanh":
        return jnp.tanh(x)
    return x


# ---------------------------------------------------------------------------
# Pallas kernel: fused (in-VMEM im2col) 3x3 stride-1 dilated conv
#   out = act( im2col(xp) @ W + shift )        one batch image per grid step
# ---------------------------------------------------------------------------
def _conv3x3_kernel(xp_ref, w_ref, shift_ref, o_ref, *, dil, act):
    _, H, W, Cout = o_ref.shape
    Cin = xp_ref.shape[3]
    # Build the (H*W, 9*Cin) im2col matrix in VMEM: 9 static tap slices of the
    # padded activation, concatenated along the lane dim (Cin % 128 == 0).
    taps = []
    for di in range(3):
        for dj in range(3):
            t = xp_ref[0, dil * di:dil * di + H, dil * dj:dil * dj + W, :]
            taps.append(t.reshape(H * W, Cin))
    a = jnp.concatenate(taps, axis=-1)                        # (H*W, 9*Cin)
    # Single whole-K matmul on the MXU (no K grid / accumulator scratch).
    out = jnp.dot(a, w_ref[...], preferred_element_type=jnp.float32)
    out = _apply_act(out + shift_ref[...], act)
    o_ref[...] = out.reshape(1, H, W, Cout).astype(o_ref.dtype)


def _conv3x3_pallas(x, w_hwio, shift, *, dilation, act, out_dtype):
    """x: (B,H,W,Cin); w_hwio: (3,3,Cin,Cout) with BN scale already folded."""
    B, H, W, Cin = x.shape
    Cout = w_hwio.shape[3]
    d = dilation
    xp = jnp.pad(x.astype(jnp.bfloat16), ((0, 0), (d, d), (d, d), (0, 0)))
    Hp, Wp = H + 2 * d, W + 2 * d
    wmat = w_hwio.reshape(9 * Cin, Cout).astype(jnp.bfloat16)  # tap-major K
    shift2 = shift.reshape(1, Cout).astype(jnp.float32)

    return pl.pallas_call(
        functools.partial(_conv3x3_kernel, dil=d, act=act),
        out_shape=jax.ShapeDtypeStruct((B, H, W, Cout), out_dtype),
        grid=(B,),
        in_specs=[
            pl.BlockSpec((1, Hp, Wp, Cin), lambda b: (b, 0, 0, 0)),  # padded img
            pl.BlockSpec((9 * Cin, Cout), lambda b: (0, 0)),         # weights
            pl.BlockSpec((1, Cout), lambda b: (0, 0)),               # shift
        ],
        out_specs=pl.BlockSpec((1, H, W, Cout), lambda b: (b, 0, 0, 0)),
        compiler_params=pltpu.CompilerParams(
            dimension_semantics=("parallel",),       # 2 steps -> both v7x TCs
            vmem_limit_bytes=32 * 1024 * 1024,       # <= v7x scoped default
        ),
    )(xp, wmat, shift2)


# ---------------------------------------------------------------------------
# XLA conv path (thin-channel / strided / tiny layers)
# ---------------------------------------------------------------------------
def _conv2d_xla(x, w_hwio, shift, *, stride, dilation, padding, act, out_dtype):
    pt, pb, plft, prt = _norm_pad(padding)
    y = lax.conv_general_dilated(
        x.astype(jnp.float32), w_hwio.astype(jnp.float32),
        window_strides=(stride, stride),
        padding=((pt, pb), (plft, prt)),
        rhs_dilation=(dilation, dilation),
        dimension_numbers=("NHWC", "HWIO", "NHWC"))
    y = y + shift.reshape(1, 1, 1, -1).astype(jnp.float32)
    return _apply_act(y, act).astype(out_dtype)


# ---------------------------------------------------------------------------
# Conv dispatchers (NHWC)
# ---------------------------------------------------------------------------
def conv2d_nhwc(x, w_oihw, scale, shift, *, stride=1, dilation=1, padding=0,
                act="relu", out_dtype=jnp.float32):
    """w_oihw: (Cout,Cin,kh,kw) PyTorch Conv2d layout. Fold BN scale into W."""
    Cout, Cin, kh, kw = w_oihw.shape
    w_hwio = w_oihw.transpose(2, 3, 1, 0) * scale.reshape(1, 1, 1, Cout)
    pad = _norm_pad(padding)
    symmetric = pad[0] == pad[1] == pad[2] == pad[3]
    if (stride == 1 and kh == 3 and kw == 3 and symmetric
            and pad[0] == dilation and Cin % 128 == 0 and Cout % 128 == 0):
        return _conv3x3_pallas(x, w_hwio, shift, dilation=dilation, act=act,
                               out_dtype=out_dtype)
    return _conv2d_xla(x, w_hwio, shift, stride=stride, dilation=dilation,
                       padding=padding, act=act, out_dtype=out_dtype)


def conv_transpose2d_s1_nhwc(x, w, scale, shift, *, padding=0, act="relu",
                             out_dtype=jnp.float32):
    """Stride-1 ConvTranspose2d: flip kernel, swap channel axes, pad k-1-p."""
    k = w.shape[2]
    w_oihw = jnp.flip(w, axis=(2, 3)).transpose(1, 0, 2, 3)   # (Cout,Cin,k,k)
    return conv2d_nhwc(x, w_oihw, scale, shift, stride=1, dilation=1,
                       padding=k - 1 - padding, act=act, out_dtype=out_dtype)


def conv_transpose2d_s2_nhwc(x, w, scale, shift, *, act="relu",
                             out_dtype=jnp.float32):
    """ConvTranspose2d(k=4, stride=2, padding=1) as ONE 3x3 conv + interleave.

    The four output-pixel parities are independent 2x2 convs on the original
    input; their kernels are zero-embedded into a shared 3x3 window and packed
    along the output-channel dim (4*Cout lanes) so the whole deconv is a
    single matmul / single launch.  x: (B,H,W,Cin); w: (Cin,Cout,4,4).
    """
    Cin, Cout = w.shape[0], w.shape[1]
    assert w.shape[2] == 4 and w.shape[3] == 4
    w3 = jnp.zeros((3, 3, Cin, 4, Cout), w.dtype)
    for py in (0, 1):
        for px in (0, 1):
            q = 2 * py + px
            for th in (0, 1):
                for tw in (0, 1):
                    kh = 3 - py - 2 * th
                    kw = 3 - px - 2 * tw
                    w3 = w3.at[py + th, px + tw, :, q, :].set(w[:, :, kh, kw])
    w3_oihw = w3.reshape(3, 3, Cin, 4 * Cout).transpose(3, 2, 0, 1)
    scale4 = jnp.tile(scale, 4)
    shift4 = jnp.tile(shift, 4)
    y = conv2d_nhwc(x, w3_oihw, scale4, shift4, stride=1, dilation=1,
                    padding=1, act=act, out_dtype=out_dtype)   # (B,H,W,4*Cout)
    B, H, W, _ = y.shape
    y = y.reshape(B, H, W, 2, 2, Cout).transpose(0, 1, 3, 2, 4, 5)
    return y.reshape(B, 2 * H, 2 * W, Cout)


# ---------------------------------------------------------------------------
# Parameter construction (deterministic, synthetic weights; eval-mode BN fold)
# ---------------------------------------------------------------------------
_BN_EPS = 1e-5
_BN_SCALE = 1.0 / (1.0 + _BN_EPS) ** 0.5   # gamma=1, beta=0, mean=0, var=1


def _init_wb(key, shape_w, cout, std=0.05):
    kw_, kb_ = jax.random.split(key)
    w = jax.random.normal(kw_, shape_w, jnp.float32) * std
    b = jax.random.normal(kb_, (cout,), jnp.float32) * std
    return w, b


def init_actor_params(key):
    keys = jax.random.split(key, 16)
    p = {"bbox_enc": [], "mix": []}

    # bbox_enc: ConvTranspose2d + BN + ReLU, 1x1 -> 4 -> 8 -> 16 -> 32
    bbox_cfg = [(4, 8, 1, 0), (8, 8, 2, 1), (8, 8, 2, 1), (8, 8, 2, 1)]
    for li, (cin, cout, stride, pad) in enumerate(bbox_cfg):
        w, b = _init_wb(keys[li], (cin, cout, 4, 4), cout)
        scale = jnp.full((cout,), _BN_SCALE, jnp.float32)
        shift = b * _BN_SCALE          # conv bias folded through eval-mode BN
        p["bbox_enc"].append(dict(w=w, scale=scale, shift=shift,
                                  stride=stride, padding=pad))

    # mix
    mix_cfg = [
        # kind, cin, cout, k, stride, dilation, pad, bn, act
        ("conv", 24, 64, 3, 2, 1, 1, True, "relu"),
        ("conv", 64, 128, 3, 2, 1, 1, True, "relu"),
        ("conv", 128, 256, 3, 1, 1, 1, True, "relu"),
        ("conv", 256, 256, 3, 1, 2, 2, True, "relu"),
        ("conv", 256, 256, 3, 1, 4, 4, True, "relu"),
        ("conv", 256, 256, 3, 1, 8, 8, True, "relu"),
        ("deconv", 256, 256, 4, 2, 1, 1, True, "relu"),
        ("deconv", 256, 256, 4, 2, 1, 1, True, "relu"),
        ("conv", 256, 64, 3, 1, 1, 1, True, "relu"),
        ("conv", 64, 8, 3, 1, 1, 1, False, "tanh"),   # nn.Conv2d(64,8,3,1,1)+Tanh
    ]
    for li, (kind, cin, cout, k, stride, dil, pad, bn, act) in enumerate(mix_cfg):
        wshape = (cin, cout, k, k) if kind == "deconv" else (cout, cin, k, k)
        w, b = _init_wb(keys[4 + li], wshape, cout)
        if bn:
            scale = jnp.full((cout,), _BN_SCALE, jnp.float32)
            shift = b * _BN_SCALE
        else:
            scale = jnp.ones((cout,), jnp.float32)
            shift = b
        p["mix"].append(dict(kind=kind, w=w, scale=scale, shift=shift,
                             stride=stride, dilation=dil, padding=pad, act=act))
    return p


# ---------------------------------------------------------------------------
# Actor forward (NHWC internally; NCHW at the PyTorch-facing boundaries)
# ---------------------------------------------------------------------------
def actor_forward(params, state, max_a):
    f, bbox = state[:, :-4], state[:, -4:]
    bs, dim = f.shape
    half = dim // 2
    f_noise = f[:, :half].reshape(bs, 8, 32, 32).transpose(0, 2, 3, 1)
    f_now = f[:, half:].reshape(bs, 8, 32, 32).transpose(0, 2, 3, 1)
    h = bbox.reshape(bs, 4, 1, 1).transpose(0, 2, 3, 1)        # (bs,1,1,4)

    # bbox_enc (tiny layers -> XLA conv path inside the dispatcher)
    for layer in params["bbox_enc"]:
        if layer["stride"] == 1:
            h = conv_transpose2d_s1_nhwc(h, layer["w"], layer["scale"],
                                         layer["shift"], padding=layer["padding"],
                                         act="relu", out_dtype=jnp.float32)
        else:
            h = conv_transpose2d_s2_nhwc(h, layer["w"], layer["scale"],
                                         layer["shift"], act="relu",
                                         out_dtype=jnp.float32)
    f_bbox = h                                                  # (bs,32,32,8)

    x = jnp.concatenate([f_noise, f_now, f_bbox], axis=3)       # (bs,32,32,24)

    n_mix = len(params["mix"])
    for li, layer in enumerate(params["mix"]):
        # bf16 intermediates (halves HBM traffic); last layer in f32.
        out_dtype = jnp.float32 if li == n_mix - 1 else jnp.bfloat16
        if layer["kind"] == "conv":
            x = conv2d_nhwc(x, layer["w"], layer["scale"], layer["shift"],
                            stride=layer["stride"], dilation=layer["dilation"],
                            padding=layer["padding"], act=layer["act"],
                            out_dtype=out_dtype)
        else:
            x = conv_transpose2d_s2_nhwc(x, layer["w"], layer["scale"],
                                         layer["shift"], act=layer["act"],
                                         out_dtype=out_dtype)
    action = x.transpose(0, 3, 1, 2)                            # back to NCHW
    return action * max_a


if __name__ == "__main__":
    bs = 2
    max_a = 1.0
    state_dim = 2 * 8 * 32 * 32 + 4   # 16388 (the view() calls fix 8x32x32)

    key = jax.random.PRNGKey(0)
    k_state, k_params = jax.random.split(key)
    state = jax.random.normal(k_state, (bs, state_dim), jnp.float32)
    params = init_actor_params(k_params)

    # --- check 1: fused Pallas 3x3 dilated conv vs XLA conv (bf16 MXU) ------
    k1, k2 = jax.random.split(jax.random.PRNGKey(1))
    xt = jax.random.normal(k1, (2, 8, 8, 128), jnp.float32)
    wt = jax.random.normal(k2, (256, 128, 3, 3), jnp.float32) * 0.05
    sct = jnp.linspace(0.8, 1.2, 256).astype(jnp.float32)
    sht = jnp.linspace(-0.1, 0.1, 256).astype(jnp.float32)
    got = conv2d_nhwc(xt, wt, sct, sht, stride=1, dilation=2, padding=2,
                      act="relu", out_dtype=jnp.float32)
    ref = _conv2d_xla(xt, wt.transpose(2, 3, 1, 0) * sct.reshape(1, 1, 1, -1),
                      sht, stride=1, dilation=2, padding=2, act="relu",
                      out_dtype=jnp.float32)
    got, ref = jax.block_until_ready((got, ref))
    assert got.shape == ref.shape == (2, 8, 8, 256)
    assert jnp.allclose(got, ref, atol=5e-2, rtol=5e-2), float(
        jnp.max(jnp.abs(got - ref)))

    # --- check 2: fused single-launch stride-2 deconv vs lhs-dilated conv ---
    k3, k4 = jax.random.split(jax.random.PRNGKey(2))
    xt2 = jax.random.normal(k3, (2, 8, 8, 128), jnp.float32)
    wt2 = jax.random.normal(k4, (128, 32, 4, 4), jnp.float32) * 0.05
    sct2 = jnp.linspace(0.8, 1.2, 32).astype(jnp.float32)
    sht2 = jnp.linspace(-0.1, 0.1, 32).astype(jnp.float32)
    got2 = conv_transpose2d_s2_nhwc(xt2, wt2, sct2, sht2, act="relu",
                                    out_dtype=jnp.float32)       # Pallas path
    wt2_conv = jnp.flip(wt2, (2, 3)).transpose(2, 3, 0, 1)        # HWIO
    ref2 = lax.conv_general_dilated(
        xt2, wt2_conv, window_strides=(1, 1), padding=((2, 2), (2, 2)),
        lhs_dilation=(2, 2), dimension_numbers=("NHWC", "HWIO", "NHWC"))
    ref2 = jnp.maximum(ref2 * sct2.reshape(1, 1, 1, -1)
                       + sht2.reshape(1, 1, 1, -1), 0.0)
    got2, ref2 = jax.block_until_ready((got2, ref2))
    assert got2.shape == ref2.shape == (2, 16, 16, 32)
    assert jnp.allclose(got2, ref2, atol=5e-2, rtol=5e-2), float(
        jnp.max(jnp.abs(got2 - ref2)))

    # --- full Actor forward -------------------------------------------------
    fwd = jax.jit(lambda s: actor_forward(params, s, max_a))
    out = fwd(state)
    out = jax.block_until_ready(out)

    assert out.shape == (bs, 8, 32, 32), out.shape
    assert bool(jnp.all(jnp.isfinite(out)))
    assert bool(jnp.all(jnp.abs(out) <= max_a + 1e-6))   # tanh * max_a bound
    print("KERNEL_OK")
</pallas_src>

<mosaic_0001>
module attributes {stable_mosaic.version = 11 : i64} {
  func.func @_conv3x3_kernel(%arg0: i32, %arg1: memref<1x12x12x128xbf16, #tpu.memory_space<vmem>>, %arg2: memref<1152x256xbf16, #tpu.memory_space<vmem>>, %arg3: memref<1x256xf32, #tpu.memory_space<vmem>>, %arg4: memref<1x8x8x256xf32, #tpu.memory_space<vmem>>) attributes {dimension_semantics = [#tpu.dimension_semantics<parallel>], iteration_bounds = array<i64: 2>, scalar_prefetch = 0 : i64, scratch_operands = 0 : i64, tpu.core_type = #tpu.core_type<tc>, window_params = [{transform_indices = @transform_0, window_bounds = array<i64: 1, 12, 12, 128>}, {pipeline_mode = #tpu.pipeline_mode<synchronous>, transform_indices = @transform_1, window_bounds = array<i64: 1152, 256>}, {pipeline_mode = #tpu.pipeline_mode<synchronous>, transform_indices = @transform_2, window_bounds = array<i64: 1, 256>}, {transform_indices = @transform_3, window_bounds = array<i64: 1, 8, 8, 256>}]} {
    %c0 = arith.constant 0 : index
    %c0_0 = arith.constant 0 : index
    %c0_1 = arith.constant 0 : index
    %c0_2 = arith.constant 0 : index
    %0 = vector.load %arg1[%c0, %c0_0, %c0_1, %c0_2] : memref<1x12x12x128xbf16, #tpu.memory_space<vmem>>, vector<1x8x8x128xbf16>
    %1 = vector.shape_cast %0 : vector<1x8x8x128xbf16> to vector<8x8x128xbf16>
    %2 = vector.shape_cast %1 : vector<8x8x128xbf16> to vector<64x128xbf16>
    %c0_3 = arith.constant 0 : index
    %c0_4 = arith.constant 0 : index
    %c2 = arith.constant 2 : index
    %c0_5 = arith.constant 0 : index
    %3 = vector.load %arg1[%c0_3, %c0_4, %c2, %c0_5] : memref<1x12x12x128xbf16, #tpu.memory_space<vmem>>, vector<1x8x8x128xbf16>
    %4 = vector.shape_cast %3 : vector<1x8x8x128xbf16> to vector<8x8x128xbf16>
    %5 = vector.shape_cast %4 : vector<8x8x128xbf16> to vector<64x128xbf16>
    %c0_6 = arith.constant 0 : index
    %c0_7 = arith.constant 0 : index
    %c4 = arith.constant 4 : index
    %c0_8 = arith.constant 0 : index
    %6 = vector.load %arg1[%c0_6, %c0_7, %c4, %c0_8] : memref<1x12x12x128xbf16, #tpu.memory_space<vmem>>, vector<1x8x8x128xbf16>
    %7 = vector.shape_cast %6 : vector<1x8x8x128xbf16> to vector<8x8x128xbf16>
    %8 = vector.shape_cast %7 : vector<8x8x128xbf16> to vector<64x128xbf16>
    %c0_9 = arith.constant 0 : index
    %c2_10 = arith.constant 2 : index
    %c0_11 = arith.constant 0 : index
    %c0_12 = arith.constant 0 : index
    %9 = vector.load %arg1[%c0_9, %c2_10, %c0_11, %c0_12] : memref<1x12x12x128xbf16, #tpu.memory_space<vmem>>, vector<1x8x8x128xbf16>
    %10 = vector.shape_cast %9 : vector<1x8x8x128xbf16> to vector<8x8x128xbf16>
    %11 = vector.shape_cast %10 : vector<8x8x128xbf16> to vector<64x128xbf16>
    %c0_13 = arith.constant 0 : index
    %c2_14 = arith.constant 2 : index
    %c2_15 = arith.constant 2 : index
    %c0_16 = arith.constant 0 : index
    %12 = vector.load %arg1[%c0_13, %c2_14, %c2_15, %c0_16] : memref<1x12x12x128xbf16, #tpu.memory_space<vmem>>, vector<1x8x8x128xbf16>
    %13 = vector.shape_cast %12 : vector<1x8x8x128xbf16> to vector<8x8x128xbf16>
    %14 = vector.shape_cast %13 : vector<8x8x128xbf16> to vector<64x128xbf16>
    %c0_17 = arith.constant 0 : index
    %c2_18 = arith.constant 2 : index
    %c4_19 = arith.constant 4 : index
    %c0_20 = arith.constant 0 : index
    %15 = vector.load %arg1[%c0_17, %c2_18, %c4_19, %c0_20] : memref<1x12x12x128xbf16, #tpu.memory_space<vmem>>, vector<1x8x8x128xbf16>
    %16 = vector.shape_cast %15 : vector<1x8x8x128xbf16> to vector<8x8x128xbf16>
    %17 = vector.shape_cast %16 : vector<8x8x128xbf16> to vector<64x128xbf16>
    %c0_21 = arith.constant 0 : index
    %c4_22 = arith.constant 4 : index
    %c0_23 = arith.constant 0 : index
    %c0_24 = arith.constant 0 : index
    %18 = vector.load %arg1[%c0_21, %c4_22, %c0_23, %c0_24] : memref<1x12x12x128xbf16, #tpu.memory_space<vmem>>, vector<1x8x8x128xbf16>
    %19 = vector.shape_cast %18 : vector<1x8x8x128xbf16> to vector<8x8x128xbf16>
    %20 = vector.shape_cast %19 : vector<8x8x128xbf16> to vector<64x128xbf16>
    %c0_25 = arith.constant 0 : index
    %c4_26 = arith.constant 4 : index
    %c2_27 = arith.constant 2 : index
    %c0_28 = arith.constant 0 : index
    %21 = vector.load %arg1[%c0_25, %c4_26, %c2_27, %c0_28] : memref<1x12x12x128xbf16, #tpu.memory_space<vmem>>, vector<1x8x8x128xbf16>
    %22 = vector.shape_cast %21 : vector<1x8x8x128xbf16> to vector<8x8x128xbf16>
    %23 = vector.shape_cast %22 : vector<8x8x128xbf16> to vector<64x128xbf16>
    %c0_29 = arith.constant 0 : index
    %c4_30 = arith.constant 4 : index
    %c4_31 = arith.constant 4 : index
    %c0_32 = arith.constant 0 : index
    %24 = vector.load %arg1[%c0_29, %c4_30, %c4_31, %c0_32] : memref<1x12x12x128xbf16, #tpu.memory_space<vmem>>, vector<1x8x8x128xbf16>
    %25 = vector.shape_cast %24 : vector<1x8x8x128xbf16> to vector<8x8x128xbf16>
    %26 = vector.shape_cast %25 : vector<8x8x128xbf16> to vector<64x128xbf16>
    %27 = tpu.concatenate %2, %5, %8, %11, %14, %17, %20, %23, %26 in 1 : vector<64x128xbf16>, vector<64x128xbf16>, vector<64x128xbf16>, vector<64x128xbf16>, vector<64x128xbf16>, vector<64x128xbf16>, vector<64x128xbf16>, vector<64x128xbf16>, vector<64x128xbf16> -> vector<64x1152xbf16>
    %c0_33 = arith.constant 0 : index
    %c0_34 = arith.constant 0 : index
    %28 = vector.load %arg2[%c0_33, %c0_34] : memref<1152x256xbf16, #tpu.memory_space<vmem>>, vector<1152x256xbf16>
    %cst = arith.constant dense<0.000000e+00> : vector<64x256xf32>
    %29 = tpu.matmul %27, %28, %cst {dimension_numbers = #tpu.dot_dimension_numbers<[1], [0], [0], [1], [0, 0, 1, 1], [], []>} : vector<64x1152xbf16>, vector<1152x256xbf16>, vector<64x256xf32> -> vector<64x256xf32>
    %c0_35 = arith.constant 0 : index
    %c0_36 = arith.constant 0 : index
    %30 = vector.load %arg3[%c0_35, %c0_36] : memref<1x256xf32, #tpu.memory_space<vmem>>, vector<1x256xf32>
    %31 = vector.broadcast %30 : vector<1x256xf32> to vector<64x256xf32>
    %32 = arith.addf %29, %31 : vector<64x256xf32>
    %cst_37 = arith.constant 0.000000e+00 : f32
    %33 = vector.broadcast %cst_37 : f32 to vector<64x256xf32>
    %34 = arith.maximumf %32, %33 : vector<64x256xf32>
    %35 = vector.shape_cast %34 : vector<64x256xf32> to vector<1x8x8x256xf32>
    %c0_38 = arith.constant 0 : index
    %c0_39 = arith.constant 0 : index
    %c0_40 = arith.constant 0 : index
    %c0_41 = arith.constant 0 : index
    %36 = vector.load %arg4[%c0_38, %c0_39, %c0_40, %c0_41] : memref<1x8x8x256xf32, #tpu.memory_space<vmem>>, vector<1x8x8x256xf32>
    tpu.vector_store %arg4[%c0_38, %c0_39, %c0_40, %c0_41], %35 {strides = array<i32>} : memref<1x8x8x256xf32, #tpu.memory_space<vmem>>, vector<1x8x8x256xf32>,
    return
  }
  func.func @transform_0(%arg0: i32) -> (i32, i32, i32, i32) {
    %c0_i32 = arith.constant 0 : i32
    %c0_i32_0 = arith.constant 0 : i32
    %c0_i32_1 = arith.constant 0 : i32
    %c0_i32_2 = arith.constant 0 : i32
    return %arg0, %c0_i32, %c0_i32_0, %c0_i32_1 : i32, i32, i32, i32
  }
  func.func @transform_1(%arg0: i32) -> (i32, i32) {
    %c0_i32 = arith.constant 0 : i32
    %c0_i32_0 = arith.constant 0 : i32
    %c0_i32_1 = arith.constant 0 : i32
    return %c0_i32, %c0_i32_0 : i32, i32
  }
  func.func @transform_2(%arg0: i32) -> (i32, i32) {
    %c0_i32 = arith.constant 0 : i32
    %c0_i32_0 = arith.constant 0 : i32
    %c0_i32_1 = arith.constant 0 : i32
    return %c0_i32, %c0_i32_0 : i32, i32
  }
  func.func @transform_3(%arg0: i32) -> (i32, i32, i32, i32) {
    %c0_i32 = arith.constant 0 : i32
    %c0_i32_0 = arith.constant 0 : i32
    %c0_i32_1 = arith.constant 0 : i32
    %c0_i32_2 = arith.constant 0 : i32
    return %arg0, %c0_i32, %c0_i32_0, %c0_i32_1 : i32, i32, i32, i32
  }
}

</mosaic_0001>

<bundles_post_ra>
// kernel: tpu_custom_call.1
= control target key start
LH: loop header
LB: loop body
LE: loop exit
PB: predicated region body
PF: predicated region fallthrough
CT: control target
= control target key end

     0   :  { %8 = vsyncpa [#allocation3], 0  ;;  %s3368_s0 = inlined_call_operand.vmem [shape: bf16[2,12,12,128], index: 0, kind: input, shape index: {}]   ;;  %s3369_s1 = inlined_call_operand.hbm [shape: bf16[1152,256], index: 1, kind: input, shape index: {}]   ;;  %s3370_s2 = inlined_call_operand.vmem [shape: f32[1,256], index: 2, kind: input, shape index: {}]   ;;  %s3371_s3 = inlined_call_operand.hbm [shape: f32[2,8,8,256], index: 3, kind: output, shape index: {}]  }
   0x1   :  { %9 = vsyncpa [#allocation4], 0 }
   0x2   :  { %11 = vsyncpa [#allocation4 + $0x1], 0  ;;  %s2955_s12 = smov 0   ;;  %s2957_s13 = smov 0  }
   0x3   :  { %s2959_s14 = smov 0   ;;  %s2961_s15 = smov 0  }
   0x4 LB: > { %s2976_s16 = sadd.s32 4294967295, %s2926_s15   ;;  %s2130_s17 = sadd.s32 4294967294, %s2926_s15   ;;  %s2926_s15 = sphi %s2961_s15, %s3391_s15   ;;  %s2922_s14 = sphi %s2959_s14, %s3390_s14   ;;  %s2918_s13 = sphi %s2957_s13, %s3389_s13   ;;  %s2914_s12 = sphi %s2955_s12, %s3388_s12  }
   0x5   : > { %s2980_s18 = sadd.s32 1, %s2926_s15   ;;  %s92_s19 = sadd.s32 1, %s2922_s14 }
   0x6   : > { %s89_s20 = ssub.s32 %s2926_s15, %s2980_s18  ;;  %p102_p0 = scmp.ne.s32.totalorder %s2922_s14, %s2918_s13 }
   0x7   : > { %p90_p1 = scmp.eq.s32.totalorder %s89_s20, 0  ;;  %p103_p2 = scmp.eq.s32.totalorder %s2976_s16, 1 }
   0x8   : > { %p108_p3 = scmp.ne.s32.totalorder %s2918_s13, %s2914_s12  ;;  %p109_p4 = scmp.eq.s32.totalorder %s2130_s17, 1 }
   0x9   : > { %s2991_s21 = scalar_select %p90_p1, %s2922_s14, %s92_s19  }
   0xa   : > { %p2993_p5 = por %p103_p2, %p102_p0  ;;  %p2997_p6 = por %p109_p4, %p108_p3 }
   0xb   : > { %p2131_p7 = scmp.ge.s32.totalorder %s2926_s15, 1  ;;  %p116_p8 = scmp.lt.s32.totalorder %s2926_s15, 3 }
   0xc   : > { %s3375_s22 = scalar_select %p2993_p5, 1, 0 }
   0xd   : > { %s3376_s23 = scalar_select %p2997_p6, 1, 0 }
   0xe   : > { %p3372_p9 = scmp.eq.s32.totalorder %s2976_s16, 0  ;;  %p3004_p10 = pnand %p2131_p7, %p116_p8 }
   0xf   : > { %s2928_s25 = smov [#allocation2]   ;;  %s2832_s30 = scalar_lea.hbm %s3369_s1, 18432 }
  0x10   : > { %s3377_s24 = scalar_select %p3004_p10, 1, 0 }
  0x11   : > { %s128_s26 = sshll.u32 %s2928_s25, 4  ;;  %p2555_p11 = pneg %p3004_p10  ;;  %s129_s26 = int_to_ptr.vmem [resolvable:$true] %s128_s26 }
  0x12   : > { %p2833_p13 = scmp.ne.s32.totalorder %s3369_s1, %s2832_s30  ;;  %p2839_p3 = scmp.lt.u32.totalorder %s2832_s30, %s3369_s1 }
  0x13   : > { %p3012_p12 = pnand %p3372_p9, %p2555_p11 }
  0x15   : > { %p2834_p0 = pneg %p3012_p12 }
  0x17   : > { %p2835_p1 = pnand %p2834_p0, %p2833_p13 }
  0x19   : > { %p2836_p2 = pneg %p2835_p1 }
  0x1b   : > { %p2841_p4 = pnand %p2839_p3, %p2836_p2 }
  0x1d   : > { %2844 = shalt.err (!%p2841_p4)
}
  0x1e   : > { %s2845_s8 = scalar_lea.vmem %s129_s26, 18432  ;;  %p2853_p9 = scmp.lt.s32.totalorder %s129_s26, %s129_s26 }
  0x1f   : > { %p2846_p7 = scmp.ne.s32.totalorder %s129_s26, %s2845_s8  ;;  %p2854_p6 = scmp.lt.s32.totalorder %s2845_s8, %s2845_s8 }
  0x21   : > { %p2848_p8 = pnand %p2846_p7, %p2834_p0  ;;  %p2855_p5 = por %p2854_p6, %p2853_p9 }
  0x23   : > { %p2849_p11 = pneg %p2848_p8 }
  0x25   : > { %p2856_p10 = pnand %p2855_p5, %p2849_p11 }
  0x27   : > { %2859 = shalt.err (!%p2856_p10)
}
  0x28   : > { %s2929_s9 = smov 128   ;;  %s2930_s10 = smov 8  }
  0x29   : > { %2558 = dma.hbm_to_vmem [thread:$0]  (!%p3012_p12), %s3369_s1, 18432, %s129_s26, [#allocation3], %s2929_s9, %s2929_s9, %s2930_s10  }
  0x2a   : > { %p3379_p13 = scmp.ne.s32.totalorder %s3377_s24, 0 }
  0x2b   : > { %p3380_p1 = scmp.eq.s32.totalorder (!%p3379_p13), %s2976_s16, 0 }
  0x2c   : > { %155 = sbr.rel (%p3379_p13) target bundleno = 456 (0x1c8), region = 32 }
  0x33   : > { %2905 = dma.done.wait (%p3380_p1), [#allocation3], 18432   ;;  %p3381_p0 = pmov %p3380_p1 }
  0x34   : > { %v2604_v0 = vld [vmem:[#allocation2 + $0x4] ss:$8 sps:$4 sm:$0xff]   ;;  %v2608_v2 = vld [vmem:[#allocation2] ss:$8 sps:$4 sm:$0xff]   ;;  %v2610_v4 = vld [vmem:[#allocation2 + $0x14] ss:$8 sps:$4 sm:$0xff]  }
  0x35   : > { %2907 = vsyncadd (%p3381_p0), [#allocation3], 4294948864  ;;  %v2606_v1 = vld [vmem:[#allocation2 + $0x204] ss:$8 sps:$4 sm:$0xff]   ;;  %1645 = vmatprep.subr.bf16.mxu1 %v2604_v0  ;;  %v2609_v3 = vld [vmem:[#allocation2 + $0x200] ss:$8 sps:$4 sm:$0xff]  }
  0x36   : > { %1791 = vmatprep.subr.bf16.mxu0 %v2606_v1  ;;  %1646 = vmatpush1.bf16.msra.mxu1 %v2608_v2  ;;  %v2612_v5 = vld [vmem:[#allocation2 + $0x214] ss:$8 sps:$4 sm:$0xff]   ;;  %v2614_v6 = vld [vmem:[#allocation2 + $0x10] ss:$8 sps:$4 sm:$0xff]   ;;  %v2616_v8 = vld [vmem:[#allocation2 + $0x24] ss:$8 sps:$4 sm:$0xff]  }
  0x37   : > { %1792 = vmatpush1.bf16.msra.mxu0 %v2609_v3  ;;  %1647 = vmatprep.subr.bf16.mxu1 %v2610_v4  ;;  %v2615_v7 = vld [vmem:[#allocation2 + $0x210] ss:$8 sps:$4 sm:$0xff]   ;;  %v2618_v9 = vld [vmem:[#allocation2 + $0x224] ss:$8 sps:$4 sm:$0xff]   ;;  %v2620_v10 = vld [vmem:[#allocation2 + $0x20] ss:$8 sps:$4 sm:$0xff]  }
  0x38   : > { %1793 = vmatprep.subr.bf16.mxu0 %v2612_v5  ;;  %v2621_v11 = vld [vmem:[#allocation2 + $0x220] ss:$8 sps:$4 sm:$0xff]   ;;  %v2622_v12 = vld [vmem:[#allocation2 + $0x34] ss:$8 sps:$4 sm:$0xff]   ;;  %v2626_v14 = vld [vmem:[#allocation2 + $0x30] ss:$8 sps:$4 sm:$0xff]  }
  0x39   : > { %v2624_v13 = vld [vmem:[#allocation2 + $0x234] ss:$8 sps:$4 sm:$0xff]   ;;  %v2627_v15 = vld [vmem:[#allocation2 + $0x230] ss:$8 sps:$4 sm:$0xff]   ;;  %v2628_v16 = vld [vmem:[#allocation2 + $0x44] ss:$8 sps:$4 sm:$0xff]  }
  0x3a   : > { %1648 = vmatpush1.bf16.msra.mxu1 %v2614_v6  ;;  %v2630_v17 = vld [vmem:[#allocation2 + $0x244] ss:$8 sps:$4 sm:$0xff]   ;;  %v2632_v18 = vld [vmem:[#allocation2 + $0x40] ss:$8 sps:$4 sm:$0xff]   ;;  %v2634_v20 = vld [vmem:[#allocation2 + $0x54] ss:$8 sps:$4 sm:$0xff]  }
  0x3b   : > { %1794 = vmatpush1.bf16.msra.mxu0 %v2615_v7  ;;  %1649 = vmatprep.subr.bf16.mxu1 %v2616_v8  ;;  %v2633_v19 = vld [vmem:[#allocation2 + $0x240] ss:$8 sps:$4 sm:$0xff]   ;;  %v2636_v21 = vld [vmem:[#allocation2 + $0x254] ss:$8 sps:$4 sm:$0xff]   ;;  %v2638_v22 = vld [vmem:[#allocation2 + $0x50] ss:$8 sps:$4 sm:$0xff]  }
  0x3c   : > { %1795 = vmatprep.subr.bf16.mxu0 %v2618_v9  ;;  %v2639_v23 = vld [vmem:[#allocation2 + $0x250] ss:$8 sps:$4 sm:$0xff]   ;;  %v2640_v24 = vld [vmem:[#allocation2 + $0x64] ss:$8 sps:$4 sm:$0xff]   ;;  %v2644_v26 = vld [vmem:[#allocation2 + $0x60] ss:$8 sps:$4 sm:$0xff]  }
  0x3d   : > { %v2642_v25 = vld [vmem:[#allocation2 + $0x264] ss:$8 sps:$4 sm:$0xff]   ;;  %v2645_v27 = vld [vmem:[#allocation2 + $0x260] ss:$8 sps:$4 sm:$0xff]   ;;  %v2646_v28 = vld [vmem:[#allocation2 + $0x74] ss:$8 sps:$4 sm:$0xff]  }
  0x3e   : > { %1650 = vmatpush1.bf16.msra.mxu1 %v2620_v10  ;;  %v2648_v29 = vld [vmem:[#allocation2 + $0x274] ss:$8 sps:$4 sm:$0xff]   ;;  %v2650_v30 = vld [vmem:[#allocation2 + $0x70] ss:$8 sps:$4 sm:$0xff]   ;;  %p179_p5 = scmp.lt.s32.totalorder %s2976_s16, 1  ;;  %vm225_vm0 = vcmask 1042432  }
  0x3f   : > { %1796 = vmatpush1.bf16.msra.mxu0 %v2621_v11  ;;  %1651 = vmatprep.subr.bf16.mxu1 %v2622_v12  ;;  %v2651_v31 = vld [vmem:[#allocation2 + $0x270] ss:$8 sps:$4 sm:$0xff]   ;;  %v2652_v32 = vld [vmem:[#allocation2 + $0x84] ss:$8 sps:$4 sm:$0xff]   ;;  %v2656_v34 = vld [vmem:[#allocation2 + $0x80] ss:$8 sps:$4 sm:$0xff]  }
  0x40   : > { %1797 = vmatprep.subr.bf16.mxu0 %v2624_v13  ;;  %v2654_v33 = vld [vmem:[#allocation2 + $0x284] ss:$8 sps:$4 sm:$0xff]   ;;  %v2657_v35 = vld [vmem:[#allocation2 + $0x280] ss:$8 sps:$4 sm:$0xff]   ;;  %s180_s19 = scalar_select %p179_p5, %s2976_s16, 1  ;;  %vm226_vm1 = vcmask 1046532  }
  0x41   : > { %v2658_v36 = vld [vmem:[#allocation2 + $0x94] ss:$8 sps:$4 sm:$0xff]   ;;  %v2662_v38 = vld [vmem:[#allocation2 + $0x90] ss:$8 sps:$4 sm:$0xff]   ;;  %v2664_v40 = vld [vmem:[#allocation2 + $0xa4] ss:$8 sps:$4 sm:$0xff]  }
  0x42   : > { %1652 = vmatpush1.bf16.msra.mxu1 %v2626_v14  ;;  %v2660_v37 = vld [vmem:[#allocation2 + $0x294] ss:$8 sps:$4 sm:$0xff]   ;;  %s2548_s20 = smul.u32 96, %s180_s19  ;;  %v2663_v39 = vld [vmem:[#allocation2 + $0x290] ss:$8 sps:$4 sm:$0xff]   ;;  %vm3045_vm2 = vmor %vm225_vm0, %vm226_vm1  ;;  %vm292_vm3 = vcmask 1041408  }
  0x43   : > { %1798 = vmatpush1.bf16.msra.mxu0 %v2627_v15  ;;  %1653 = vmatprep.subr.bf16.mxu1 %v2628_v16  ;;  %v2666_v41 = vld [vmem:[#allocation2 + $0x2a4] ss:$8 sps:$4 sm:$0xff]   ;;  %v2668_v42 = vld [vmem:[#allocation2 + $0xa0] ss:$8 sps:$4 sm:$0xff]   ;;  %v2670_v45 = vld [vmem:[#allocation2 + $0xb4] ss:$8 sps:$4 sm:$0xff]  }
  0x44   : > { %1799 = vmatprep.subr.bf16.mxu0 %v2630_v17  ;;  %v2669_v43 = vld [vmem:[#allocation2 + $0x2a0] ss:$8 sps:$4 sm:$0xff]   ;;  %s3043_s26 = scalar_lea.vmem %s3368_s0, %s2548_s20  ;;  %v2672_v46 = vld [vmem:[#allocation2 + $0x2b4] ss:$8 sps:$4 sm:$0xff]   ;;  %vm293_vm4 = vcmask 1045508   ;;  %s176_s29 = sand.u32 1, %s2918_s13  }
  0x45   : > { %v2674_v47 = vld [vmem:[#allocation2 + $0xb0] ss:$8 sps:$4 sm:$0xff]   ;;  %v193_v49 = vld [vmem:[%s3043_s26] sm:$0xe]  ;;  %v194_v50 = vld [vmem:[%s3043_s26 + $0x4] sm:$0x1] }
  0x46   : > { %1654 = vmatpush1.bf16.msra.mxu1 %v2632_v18  ;;  %v2675_v48 = vld [vmem:[#allocation2 + $0x2b0] ss:$8 sps:$4 sm:$0xff]   ;;  %v195_v51 = vld [vmem:[%s3043_s26 + $0x8] sm:$0xe]  ;;  %v196_v52 = vld [vmem:[%s3043_s26 + $0xc] sm:$0x1] }
  0x47   : > { %1800 = vmatpush1.bf16.msra.mxu0 %v2633_v19  ;;  %1655 = vmatprep.subr.bf16.mxu1 %v2634_v20  ;;  %v2138_v53 = vrot.slane %v193_v49, 9  ;;  %v230_v54 = vrot.slane %v194_v50, 5  ;;  %v2139_v55 = vrot.slane %v195_v51, 9  ;;  %v234_v56 = vrot.slane %v196_v52, 5  ;;  %vm3053_vm5 = vmor %vm292_vm3, %vm293_vm4  ;;  %v2676_v58 = vld [vmem:[#allocation2 + $0xc4] ss:$8 sps:$4 sm:$0xff]  }
  0x48   : > { %1801 = vmatprep.subr.bf16.mxu0 %v2636_v21  ;;  %v2678_v59 = vld [vmem:[#allocation2 + $0x2c4] ss:$8 sps:$4 sm:$0xff]   ;;  %v2186_v60 = vld [vmem:[%s3043_s26 + $0x10] sm:$0xc]  ;;  %v2680_v61 = vld [vmem:[#allocation2 + $0xc0] ss:$8 sps:$4 sm:$0xff]  }
  0x49   : > { %v231_v62 = vsel %vm3045_vm2, %v2138_v53, %v230_v54  ;;  %v235_v63 = vsel %vm3045_vm2, %v2139_v55, %v234_v56  ;;  %v2187_v0 = vld [vmem:[%s3043_s26 + $0x14] sm:$0x3]  ;;  %v2188_v1 = vld [vmem:[%s3043_s26 + $0x18] sm:$0xc]  ;;  %v2189_v2 = vld [vmem:[%s3043_s26 + $0x1c] sm:$0x3] }
  0x4a   : > { %1656 = vmatpush1.bf16.msra.mxu1 %v2638_v22  ;;  %v2270_v3 = vcombine.low %v231_v62, %v235_v63  ;;  %v2202_v4 = vrot.slane %v2186_v60, 10  ;;  %v434_v5 = vrot.slane %v2187_v0, 6  ;;  %v2203_v6 = vrot.slane %v2188_v1, 10  ;;  %v2681_v7 = vld [vmem:[#allocation2 + $0x2c0] ss:$8 sps:$4 sm:$0xff]   ;;  %s2136_s30 = sshll.u32 %s176_s29, 7 }
  0x4b   : > { %1802 = vmatpush1.bf16.msra.mxu0 %v2639_v23  ;;  %1657 = vmatprep.subr.bf16.mxu1 %v2640_v24  ;;  %v2682_v8 = vld [vmem:[#allocation2 + $0xd4] ss:$8 sps:$4 sm:$0xff]   ;;  %v438_v9 = vrot.slane %v2189_v2, 6  ;;  %v2686_v12 = vld [vmem:[#allocation2 + $0xd0] ss:$8 sps:$4 sm:$0xff]   ;;  %s3289_s4 = scalar_lea.vmem [#allocation5], %s2136_s30 }
  0x4c   : > { %1803 = vmatprep.subr.bf16.mxu0 %v2642_v25  ;;  %v2684_v10 = vld [vmem:[#allocation2 + $0x2d4] ss:$8 sps:$4 sm:$0xff]   ;;  %v435_v11 = vsel %vm3053_vm5, %v2202_v4, %v434_v5  ;;  %v2687_v13 = vld [vmem:[#allocation2 + $0x2d0] ss:$8 sps:$4 sm:$0xff]   ;;  %1677 = vmatprep.mubr.bf16.mxu1 %v2270_v3  ;;  %v2688_v15 = vld [vmem:[#allocation2 + $0xe4] ss:$8 sps:$4 sm:$0xff]  }
  0x4d   : > { %v439_v14 = vsel %vm3053_vm5, %v2203_v6, %v438_v9  ;;  %v2690_v16 = vld [vmem:[#allocation2 + $0x2e4] ss:$8 sps:$4 sm:$0xff]   ;;  %v2162_v18 = vld [vmem:[%s3043_s26 + $0x10] sm:$0xe]  ;;  %v2163_v19 = vld [vmem:[%s3043_s26 + $0x14] sm:$0x1] }
  0x4e   : > { %1658 = vmatpush1.bf16.msra.mxu1 %v2644_v26  ;;  %v2286_v17 = vcombine.low %v435_v11, %v439_v14  ;;  %v2164_v20 = vld [vmem:[%s3043_s26 + $0x18] sm:$0xe]  ;;  %v2165_v21 = vld [vmem:[%s3043_s26 + $0x1c] sm:$0x1]  ;;  %v2692_v22 = vld [vmem:[#allocation2 + $0xe0] ss:$8 sps:$4 sm:$0xff]  }
  0x4f   : > { %1804 = vmatpush1.bf16.msra.mxu0 %v2645_v27  ;;  %1659 = vmatprep.subr.bf16.mxu1 %v2646_v28  ;;  %v2693_v23 = vld [vmem:[#allocation2 + $0x2e0] ss:$8 sps:$4 sm:$0xff]   ;;  %v2178_v24 = vrot.slane %v2162_v18, 9  ;;  %v370_v25 = vrot.slane %v2163_v19, 5  ;;  %v2179_v26 = vrot.slane %v2164_v20, 9  ;;  %v374_v27 = vrot.slane %v2165_v21, 5 }
  0x50   : > { %1805 = vmatprep.subr.bf16.mxu0 %v2648_v29  ;;  %1823 = vmatprep.mubr.bf16.mxu0 %v2286_v17  ;;  %v2694_v28 = vld [vmem:[#allocation2 + $0xf4] ss:$8 sps:$4 sm:$0xff]   ;;  %v2719_v51 = vld [vmem:[#allocation2 + $0x130] ss:$8 sps:$4 sm:$0xff]   ;;  %v2727_v53 = vld [vmem:[#allocation2 + $0x144] ss:$8 sps:$4 sm:$0xff]  }
  0x51   : > { %v2696_v29 = vld [vmem:[#allocation2 + $0x2f4] ss:$8 sps:$4 sm:$0xff]   ;;  %v2722_v52 = vld [vmem:[#allocation2 + $0x330] ss:$8 sps:$4 sm:$0xff]   ;;  %v2730_v54 = vld [vmem:[#allocation2 + $0x344] ss:$8 sps:$4 sm:$0xff]  }
  0x52   : > { %1660 = vmatpush1.bf16.msra.mxu1 %v2650_v30  ;;  %v2698_v30 = vld [vmem:[#allocation2 + $0xf0] ss:$8 sps:$4 sm:$0xff]   ;;  %v2721_v49 = vld [vmem:[#allocation2 + $0x134] ss:$8 sps:$4 sm:$0xff]   ;;  %v2190_v0 = vld [vmem:[%s3043_s26 + $0x20] sm:$0xc] }
  0x53   : > { %1806 = vmatpush1.bf16.msra.mxu0 %v2651_v31  ;;  %1661 = vmatprep.subr.bf16.mxu1 %v2652_v32  ;;  %v2699_v31 = vld [vmem:[#allocation2 + $0x2f0] ss:$8 sps:$4 sm:$0xff]   ;;  %v371_v32 = vsel %vm3045_vm2, %v2178_v24, %v370_v25  ;;  %v2724_v50 = vld [vmem:[#allocation2 + $0x334] ss:$8 sps:$4 sm:$0xff]   ;;  %v2191_v1 = vld [vmem:[%s3043_s26 + $0x24] sm:$0x3] }
  0x54   : > { %1807 = vmatprep.subr.bf16.mxu0 %v2654_v33  ;;  %v375_v33 = vsel %vm3045_vm2, %v2179_v26, %v374_v27  ;;  %v197_v55 = vld [vmem:[%s3043_s26 + $0x10] sm:$0xe]  ;;  %v198_v56 = vld [vmem:[%s3043_s26 + $0x14] sm:$0x1]  ;;  %v2725_v2 = vld [vmem:[#allocation2 + $0x140] ss:$8 sps:$4 sm:$0xff]  }
  0x55   : > { %v2140_v60 = vrot.slane %v197_v55, 9  ;;  %v2728_v3 = vld [vmem:[#allocation2 + $0x340] ss:$8 sps:$4 sm:$0xff]   ;;  %v2193_v6 = vld [vmem:[%s3043_s26 + $0x2c] sm:$0x3]  ;;  %s2451_s5 = sshll.u32 %s2976_s16, 11 }
  0x56   : > { %1662 = vmatpush1.bf16.msra.mxu1 %v2656_v34  ;;  %v2702_v34 = vld [vmem:[#allocation2 + $0x104] ss:$8 sps:$4 sm:$0xff]   ;;  %v2192_v5 = vld [vmem:[%s3043_s26 + $0x28] sm:$0xc]  ;;  %v446_v11 = vrot.slane %v2193_v6, 6  ;;  %s2056_s6 = sshll.u32 %s3289_s4, 4  ;;  %s3315_s8 = scalar_lea.hbm %s3371_s3, %s2451_s5  ;;  %s3317_s6 = int_to_ptr.vmem [resolvable:$true] %s2056_s6 }
  0x57   : > { %1808 = vmatpush1.bf16.msra.mxu0 %v2657_v35  ;;  %1663 = vmatprep.subr.bf16.mxu1 %v2658_v36  ;;  %v2705_v35 = vld [vmem:[#allocation2 + $0x304] ss:$8 sps:$4 sm:$0xff]   ;;  %v2700_v36 = vld [vmem:[#allocation2 + $0x100] ss:$8 sps:$4 sm:$0xff]   ;;  %v2731_v26 = vld [vmem:[#allocation2 + $0x150] ss:$8 sps:$4 sm:$0xff]  }
  0x58   : > { %1809 = vmatprep.subr.bf16.mxu0 %v2660_v37  ;;  %v2706_v37 = vld [vmem:[%s3043_s26] ss:$8 sps:$4 sm:$0xff]   ;;  %v2167_v19 = vld [vmem:[%s3043_s26 + $0x24] sm:$0x1]  ;;  %v2734_v27 = vld [vmem:[#allocation2 + $0x350] ss:$8 sps:$4 sm:$0xff]  }
  0x59   : > { %v2166_v18 = vld [vmem:[%s3043_s26 + $0x20] sm:$0xe]  ;;  %v2168_v20 = vld [vmem:[%s3043_s26 + $0x28] sm:$0xe]  ;;  %v378_v24 = vrot.slane %v2167_v19, 5  ;;  %s3327_s9 = scalar_lea.sflag [#allocation4], %s176_s29 }
  0x5a   : > { %1664 = vmatpush1.bf16.msra.mxu1 %v2662_v38  ;;  %v2282_v38 = vcombine.low %v371_v32, %v375_v33  ;;  %v2181_v25 = vrot.slane %v2168_v20, 9  ;;  %v2737_v33 = vld [vmem:[#allocation2 + $0x160] ss:$8 sps:$4 sm:$0xff]   ;;  %v205_v20 = vld [vmem:[%s3043_s26 + $0x30] sm:$0xe]  ;;  %s2860_s10 = scalar_lea.vmem %s3317_s6, 2048 }
  0x5b   : > { %1810 = vmatpush1.bf16.msra.mxu0 %v2663_v39  ;;  %1665 = vmatprep.subr.bf16.mxu1 %v2664_v40  ;;  %v2703_v39 = vld [vmem:[#allocation2 + $0x300] ss:$8 sps:$4 sm:$0xff]   ;;  %v2709_v40 = vld [vmem:[#allocation2 + $0x114] ss:$8 sps:$4 sm:$0xff]   ;;  %p2861_p6 = scmp.ne.s32.totalorder %s3317_s6, %s2860_s10  ;;  %p3386_p9 = scmp.ne.s32.totalorder %s3375_s22, 0 }
  0x5c   : > { %1811 = vmatprep.subr.bf16.mxu0 %v2666_v41  ;;  %v2712_v41 = vld [vmem:[#allocation2 + $0x314] ss:$8 sps:$4 sm:$0xff]   ;;  %v913_v57 = vld [vmem:[%s3370_s2] sm:$0x3]  ;;  %s2932_s11 = smov [#allocation5]  }
  0x5d   : > { %p2862_p10 = pnand %p2861_p6, %p3386_p9  ;;  %s2864_s17 = sshll.u32 %s2932_s11, 4  ;;  %s2865_s17 = int_to_ptr.vmem [resolvable:$false] %s2864_s17 }
  0x5e   : > { %1666 = vmatpush1.bf16.msra.mxu1 %v2668_v42  ;;  %v2707_v42 = vld [vmem:[#allocation2 + $0x110] ss:$8 sps:$4 sm:$0xff]   ;;  %s2866_s19 = scalar_lea.vmem %s2865_s17, 4096  ;;  %p2867_p2 = scmp.lt.s32.totalorder %s3317_s6, %s2865_s17 }
  0x5f   : > { %1812 = vmatpush1.bf16.msra.mxu0 %v2669_v43  ;;  %1667 = vmatprep.subr.bf16.mxu1 %v2670_v45  ;;  %v2710_v43 = vld [vmem:[#allocation2 + $0x310] ss:$8 sps:$4 sm:$0xff]   ;;  %v2715_v45 = vld [vmem:[#allocation2 + $0x124] ss:$8 sps:$4 sm:$0xff]   ;;  %p2863_p12 = pneg %p2862_p10  ;;  %p2868_p3 = scmp.lt.s32.totalorder %s2866_s19, %s2860_s10 }
  0x60   : > { %1813 = vmatprep.subr.bf16.mxu0 %v2672_v46  ;;  %v2718_v46 = vld [vmem:[#allocation2 + $0x324] ss:$8 sps:$4 sm:$0xff]  }
  0x61   : > { %p2869_p4 = por %p2868_p3, %p2867_p2 }
  0x62   : > { %1668 = vmatpush1.bf16.msra.mxu1 %v2674_v47  ;;  %v2713_v47 = vld [vmem:[#allocation2 + $0x120] ss:$8 sps:$4 sm:$0xff]  }
  0x63   : > { %1814 = vmatpush1.bf16.msra.mxu0 %v2675_v48  ;;  %1669 = vmatprep.subr.bf16.mxu1 %v2676_v58  ;;  %v2716_v48 = vld [vmem:[#allocation2 + $0x320] ss:$8 sps:$4 sm:$0xff]   ;;  %v199_v58 = vld [vmem:[%s3043_s26 + $0x18] sm:$0xe]  ;;  %p2870_p7 = pnand %p2869_p4, %p2863_p12 }
  0x64   : > { %1815 = vmatprep.subr.bf16.mxu0 %v2678_v59  ;;  %v200_v59 = vld [vmem:[%s3043_s26 + $0x1c] sm:$0x1]  ;;  %v2141_v62 = vrot.slane %v199_v58, 9 }
  0x65   : > { %v242_v63 = vrot.slane %v200_v59, 5 }
  0x66   : > { %1670 = vmatpush1.bf16.msra.mxu1 %v2680_v61  ;;  %v238_v61 = vrot.slane %v198_v56, 5 }
  0x67   : > { %1816 = vmatpush1.bf16.msra.mxu0 %v2681_v7  ;;  %1671 = vmatprep.subr.bf16.mxu1 %v2682_v8  ;;  %v2204_v7 = vrot.slane %v2190_v0, 10  ;;  %v442_v8 = vrot.slane %v2191_v1, 6  ;;  %v243_v9 = vsel %vm3045_vm2, %v2141_v62, %v242_v63  ;;  %v2751_v62 = vld [vmem:[#allocation2 + $0x184] ss:$8 sps:$4 sm:$0xff]   ;;  %v2170_v1 = vld [vmem:[%s3043_s26 + $0x30] sm:$0xe] }
  0x68   : > { %1817 = vmatprep.subr.bf16.mxu0 %v2684_v10  ;;  %v239_v4 = vsel %vm3045_vm2, %v2140_v60, %v238_v61  ;;  %v2205_v10 = vrot.slane %v2192_v5, 10  ;;  %v2774_v61 = vld [vmem:[%s3043_s26 + $0x20] ss:$8 sps:$4 sm:$0xff]   ;;  %v2754_v63 = vld [vmem:[#allocation2 + $0x384] ss:$8 sps:$4 sm:$0xff]  }
  0x69   : > { %v2271_v14 = vcombine.low %v239_v4, %v243_v9  ;;  %v2172_v4 = vld [vmem:[%s3043_s26 + $0x38] sm:$0xe]  ;;  %v2173_v5 = vld [vmem:[%s3043_s26 + $0x3c] sm:$0x1] }
  0x6a   : > { %1672 = vmatpush1.bf16.msra.mxu1 %v2686_v12  ;;  %v2733_v12 = vld [vmem:[#allocation2 + $0x154] ss:$8 sps:$4 sm:$0xff]   ;;  %v447_v17 = vsel %vm3053_vm5, %v2205_v10, %v446_v11  ;;  %v2183_v9 = vrot.slane %v2172_v4, 9  ;;  %v390_v10 = vrot.slane %v2173_v5, 5  ;;  %v2749_v11 = vld [vmem:[#allocation2 + $0x180] ss:$8 sps:$4 sm:$0xff]  }
  0x6b   : > { %1818 = vmatpush1.bf16.msra.mxu0 %v2687_v13  ;;  %1673 = vmatprep.subr.bf16.mxu1 %v2688_v15  ;;  %v2736_v13 = vld [vmem:[#allocation2 + $0x354] ss:$8 sps:$4 sm:$0xff]   ;;  %v443_v15 = vsel %vm3053_vm5, %v2204_v7, %v442_v8  ;;  %v2182_v7 = vrot.slane %v2170_v1, 9  ;;  %v2218_v4 = vld [vmem:[%s3043_s26 + $0x20] sm:$0xe] }
  0x6c   : > { %1819 = vmatprep.subr.bf16.mxu0 %v2690_v16  ;;  %v2761_v16 = vld [vmem:[%s3043_s26 + $0x10] ss:$8 sps:$4 sm:$0xff]   ;;  %v2287_v21 = vcombine.low %v443_v15, %v447_v17  ;;  %v2760_v15 = vld [vmem:[#allocation2 + $0x394] ss:$8 sps:$4 sm:$0xff]   ;;  %v2219_v5 = vld [vmem:[%s3043_s26 + $0x24] sm:$0x1] }
  0x6d   : > { %v2755_v17 = vld [vmem:[#allocation2 + $0x190] ss:$8 sps:$4 sm:$0xff]  }
  0x6e   : > { %1674 = vmatpush1.bf16.msra.mxu1 %v2692_v22  ;;  %v2169_v22 = vld [vmem:[%s3043_s26 + $0x2c] sm:$0x1] }
  0x6f   : > { %1820 = vmatpush1.bf16.msra.mxu0 %v2693_v23  ;;  %1675 = vmatprep.subr.bf16.mxu1 %v2694_v28  ;;  %v2180_v23 = vrot.slane %v2166_v18, 9  ;;  %v382_v28 = vrot.slane %v2169_v22, 5  ;;  %v2758_v18 = vld [vmem:[#allocation2 + $0x390] ss:$8 sps:$4 sm:$0xff]  }
  0x70   : > { %1821 = vmatprep.subr.bf16.mxu0 %v2696_v29  ;;  %v2739_v29 = vld [vmem:[#allocation2 + $0x164] ss:$8 sps:$4 sm:$0xff]   ;;  %v207_v22 = vld [vmem:[%s3043_s26 + $0x38] sm:$0xe] }
  0x71   : > { %v383_v32 = vsel %vm3045_vm2, %v2181_v25, %v382_v28  ;;  %v208_v25 = vld [vmem:[%s3043_s26 + $0x3c] sm:$0x1]  ;;  %v2145_v28 = vrot.slane %v207_v22, 9  ;;  %v262_v22 = vld [vmem:[%s3043_s26 + $0x8] sm:$0xc] }
  0x72   : > { %1676 = vmatpush1.bf16.msra.mxu1 %v2698_v30  ;;  %v379_v30 = vsel %vm3045_vm2, %v2180_v23, %v378_v24  ;;  %v2764_v23 = vld [vmem:[#allocation2 + $0x1a4] ss:$8 sps:$4 sm:$0xff]  }
  0x73   : > { %1822 = vmatpush1.bf16.msra.mxu0 %v2699_v31  ;;  %1718 = vmatprep.subr.bf16.mxu1 %v2702_v34  ;;  %v2742_v31 = vld [vmem:[#allocation2 + $0x364] ss:$8 sps:$4 sm:$0xff]   ;;  %v2740_v34 = vld [vmem:[#allocation2 + $0x360] ss:$8 sps:$4 sm:$0xff]  }
  0x74   : > { %1864 = vmatprep.subr.bf16.mxu0 %v2705_v35  ;;  %v2283_v35 = vcombine.low %v379_v30, %v383_v32  ;;  %v2767_v24 = vld [vmem:[#allocation2 + $0x3a4] ss:$8 sps:$4 sm:$0xff]   ;;  %v2198_v30 = vld [vmem:[%s3043_s26 + $0x40] sm:$0xc] }
  0x75   : > { %1678 = vmatmul.mubr.bf16.vlgmr.msra.gmra.mrb[0].mxu1 %v2706_v37  ;;  %v2745_v37 = vld [vmem:[#allocation2 + $0x174] ss:$8 sps:$4 sm:$0xff]  }
  0x76   : > { %1824 = vmatmul.mubr.bf16.vlgmr.msra.gmra.mrb[0].mxu0 %v2282_v38  ;;  %1719 = vmatpush1.bf16.msra.mxu1 %v2700_v36  ;;  %v201_v36 = vld [vmem:[%s3043_s26 + $0x20] sm:$0xe]  ;;  %v2748_v38 = vld [vmem:[#allocation2 + $0x374] ss:$8 sps:$4 sm:$0xff]  }
  0x77   : > { %1865 = vmatpush1.bf16.msra.mxu0 %v2703_v39  ;;  %1720 = vmatprep.subr.bf16.mxu1 %v2709_v40  ;;  %v202_v39 = vld [vmem:[%s3043_s26 + $0x24] sm:$0x1]  ;;  %v203_v40 = vld [vmem:[%s3043_s26 + $0x28] sm:$0xe] }
  0x78   : > { %1866 = vmatprep.subr.bf16.mxu0 %v2712_v41  ;;  %1687 = vmatprep.mubr.bf16.mxu1 %v2271_v14  ;;  %v204_v41 = vld [vmem:[%s3043_s26 + $0x2c] sm:$0x1]  ;;  %v2757_v14 = vld [vmem:[#allocation2 + $0x194] ss:$8 sps:$4 sm:$0xff]  }
  0x79   : > { %1833 = vmatprep.mubr.bf16.mxu0 %v2287_v21  ;;  %v206_v21 = vld [vmem:[%s3043_s26 + $0x34] sm:$0x1] }
  0x7a   : > { %1721 = vmatpush1.bf16.msra.mxu1 %v2707_v42  ;;  %v2142_v42 = vrot.slane %v201_v36, 9 }
  0x7b   : > { %1867 = vmatpush1.bf16.msra.mxu0 %v2710_v43  ;;  %1722 = vmatprep.subr.bf16.mxu1 %v2715_v45  ;;  %v246_v43 = vrot.slane %v202_v39, 5  ;;  %v2143_v45 = vrot.slane %v203_v40, 9 }
  0x7c   : > { %1868 = vmatprep.subr.bf16.mxu0 %v2718_v46  ;;  %v250_v46 = vrot.slane %v204_v41, 5 }
  0x7d   : > { %1688 = vmatmul.mubr.bf16.gmra.mrb[4].mxu1 %v2761_v16  ;;  %v391_v16 = vsel %vm3045_vm2, %v2183_v9, %v390_v10  ;;  %v2234_v9 = vrot.slane %v2218_v4, 9  ;;  %v507_v10 = vrot.slane %v2219_v5, 5 }
  0x7e   : > { %1723 = vmatpush1.bf16.msra.mxu1 %v2713_v47  ;;  %v2194_v47 = vld [vmem:[%s3043_s26 + $0x30] sm:$0xc]  ;;  %1834 = vmatmul.mubr.bf16.gmra.mrb[4].mxu0 %v2283_v35  ;;  %v2208_v35 = vrot.slane %v2198_v30, 10  ;;  %v2147_v30 = vrot.slane %v262_v22, 10 }
  0x7f   : > { %1869 = vmatpush1.bf16.msra.mxu0 %v2716_v48  ;;  %1724 = vmatprep.subr.bf16.mxu1 %v2721_v49  ;;  %v2195_v48 = vld [vmem:[%s3043_s26 + $0x34] sm:$0x3]  ;;  %v2196_v49 = vld [vmem:[%s3043_s26 + $0x38] sm:$0xc]  ;;  %v2206_v55 = vrot.slane %v2194_v47, 10 }
  0x80   : > { %1870 = vmatprep.subr.bf16.mxu0 %v2724_v50  ;;  %v2197_v50 = vld [vmem:[%s3043_s26 + $0x3c] sm:$0x3]  ;;  %v450_v56 = vrot.slane %v2195_v48, 6  ;;  %v2207_v59 = vrot.slane %v2196_v49, 10  ;;  %v2787_v47 = vld [vmem:[%s3043_s26 + $0x30] ss:$8 sps:$4 sm:$0xff]  }
  0x81   : > { %v454_v60 = vrot.slane %v2197_v50, 6  ;;  %v2174_v49 = vld [vmem:[%s3043_s26 + $0x40] sm:$0xe]  ;;  %v2175_v50 = vld [vmem:[%s3043_s26 + $0x44] sm:$0x1] }
  0x82   : > { %1725 = vmatpush1.bf16.msra.mxu1 %v2719_v51  ;;  %v2743_v51 = vld [vmem:[#allocation2 + $0x170] ss:$8 sps:$4 sm:$0xff]   ;;  %v451_v0 = vsel %vm3053_vm5, %v2206_v55, %v450_v56  ;;  %v394_v55 = vrot.slane %v2175_v50, 5 }
  0x83   : > { %1871 = vmatpush1.bf16.msra.mxu0 %v2722_v52  ;;  %1726 = vmatprep.subr.bf16.mxu1 %v2727_v53  ;;  %v2746_v52 = vld [vmem:[#allocation2 + $0x370] ss:$8 sps:$4 sm:$0xff]   ;;  %v247_v53 = vsel %vm3045_vm2, %v2142_v42, %v246_v43  ;;  %v2770_v42 = vld [vmem:[#allocation2 + $0x1b4] ss:$8 sps:$4 sm:$0xff]  }
  0x84   : > { %1872 = vmatprep.subr.bf16.mxu0 %v2730_v54  ;;  %v251_v54 = vsel %vm3045_vm2, %v2143_v45, %v250_v46  ;;  %v2773_v43 = vld [vmem:[#allocation2 + $0x3b4] ss:$8 sps:$4 sm:$0xff]   ;;  %v266_v50 = vld [vmem:[%s3043_s26 + $0x18] sm:$0xc] }
  0x85   : > { %v2272_v58 = vcombine.low %v247_v53, %v251_v54  ;;  %v2177_v53 = vld [vmem:[%s3043_s26 + $0x4c] sm:$0x1]  ;;  %v2184_v54 = vrot.slane %v2174_v49, 9  ;;  %v265_v49 = vld [vmem:[%s3043_s26 + $0x14] sm:$0x3] }
  0x86   : > { %1727 = vmatpush1.bf16.msra.mxu1 %v2725_v2  ;;  %v455_v2 = vsel %vm3053_vm5, %v2207_v59, %v454_v60  ;;  %v2768_v59 = vld [vmem:[#allocation2 + $0x1b0] ss:$8 sps:$4 sm:$0xff]  }
  0x87   : > { %1873 = vmatpush1.bf16.msra.mxu0 %v2728_v3  ;;  %1728 = vmatprep.subr.bf16.mxu1 %v2733_v12  ;;  %v2171_v3 = vld [vmem:[%s3043_s26 + $0x34] sm:$0x1]  ;;  %v2288_v6 = vcombine.low %v451_v0, %v455_v2  ;;  %v2752_v12 = vld [vmem:[#allocation2 + $0x380] ss:$8 sps:$4 sm:$0xff]   ;;  %v395_v60 = vsel %vm3045_vm2, %v2184_v54, %v394_v55  ;;  %v2780_v0 = vld [vmem:[#allocation2 + $0x3c4] ss:$8 sps:$4 sm:$0xff]  }
  0x88   : > { %1874 = vmatprep.subr.bf16.mxu0 %v2736_v13  ;;  %1697 = vmatprep.mubr.bf16.mxu1 %v2272_v58  ;;  %v386_v8 = vrot.slane %v2171_v3, 5  ;;  %v398_v58 = vrot.slane %v2177_v53, 5  ;;  %v2775_v2 = vld [vmem:[#allocation2 + $0x1c0] ss:$8 sps:$4 sm:$0xff]   ;;  %v2800_v3 = vld [vmem:[%s3043_s26 + $0x10] ss:$8 sps:$4 sm:$0xff]  }
  0x89   : > { %1698 = vmatmul.mubr.bf16.gmra.mrb[8].mxu1 %v2774_v61  ;;  %1843 = vmatprep.mubr.bf16.mxu0 %v2288_v6  ;;  %v2771_v61 = vld [vmem:[#allocation2 + $0x3b0] ss:$8 sps:$4 sm:$0xff]   ;;  %v2220_v6 = vld [vmem:[%s3043_s26 + $0x28] sm:$0xe] }
  0x8a   : > { %1729 = vmatpush1.bf16.msra.mxu1 %v2731_v26  ;;  %v387_v13 = vsel %vm3045_vm2, %v2182_v7, %v386_v8  ;;  %v2144_v26 = vrot.slane %v205_v20, 9  ;;  %v2221_v7 = vld [vmem:[%s3043_s26 + $0x2c] sm:$0x1]  ;;  %v2778_v8 = vld [vmem:[#allocation2 + $0x3c0] ss:$8 sps:$4 sm:$0xff]  }
  0x8b   : > { %1875 = vmatpush1.bf16.msra.mxu0 %v2734_v27  ;;  %1730 = vmatprep.subr.bf16.mxu1 %v2739_v29  ;;  %v2284_v19 = vcombine.low %v387_v13, %v391_v16  ;;  %v254_v27 = vrot.slane %v206_v21, 5  ;;  %v258_v29 = vrot.slane %v208_v25, 5  ;;  %v2783_v13 = vld [vmem:[#allocation2 + $0x1d4] ss:$8 sps:$4 sm:$0xff]   ;;  %v2784_v16 = vld [vmem:[#allocation2 + $0x3d0] ss:$8 sps:$4 sm:$0xff]  }
  0x8c   : > { %1876 = vmatprep.subr.bf16.mxu0 %v2742_v31  ;;  %v2199_v31 = vld [vmem:[%s3043_s26 + $0x44] sm:$0x3]  ;;  %v2802_v54 = vld [vmem:[#allocation2 + $0x400] ss:$8 sps:$4 sm:$0xff]  }
  0x8d   : > { %v255_v32 = vsel %vm3045_vm2, %v2144_v26, %v254_v27  ;;  %v458_v36 = vrot.slane %v2199_v31, 6  ;;  %1844 = vmatmul.mubr.bf16.gmra.mrb[8].mxu0 %v2284_v19  ;;  %v259_v39 = vsel %vm3045_vm2, %v2145_v28, %v258_v29  ;;  %v260_v19 = vld [vmem:[%s3043_s26] sm:$0xc]  ;;  %v261_v21 = vld [vmem:[%s3043_s26 + $0x4] sm:$0x3] }
  0x8e   : > { %1731 = vmatpush1.bf16.msra.mxu1 %v2737_v33  ;;  %v2200_v33 = vld [vmem:[%s3043_s26 + $0x48] sm:$0xc]  ;;  %v2273_v45 = vcombine.low %v255_v32, %v259_v39  ;;  %v2793_v25 = vld [vmem:[#allocation2 + $0x3e4] ss:$8 sps:$4 sm:$0xff]   ;;  %v2146_v28 = vrot.slane %v260_v19, 10  ;;  %v297_v29 = vrot.slane %v261_v21, 6 }
  0x8f   : > { %1877 = vmatpush1.bf16.msra.mxu0 %v2740_v34  ;;  %1732 = vmatprep.subr.bf16.mxu1 %v2745_v37  ;;  %v2201_v34 = vld [vmem:[%s3043_s26 + $0x4c] sm:$0x3]  ;;  %v2762_v37 = vld [vmem:[#allocation2 + $0x1a0] ss:$8 sps:$4 sm:$0xff]   ;;  %v2209_v40 = vrot.slane %v2200_v33, 10  ;;  %v459_v46 = vsel %vm3053_vm5, %v2208_v35, %v458_v36 }
  0x90   : > { %1878 = vmatprep.subr.bf16.mxu0 %v2748_v38  ;;  %v2765_v38 = vld [vmem:[#allocation2 + $0x3a0] ss:$8 sps:$4 sm:$0xff]   ;;  %v462_v41 = vrot.slane %v2201_v34, 6  ;;  %1707 = vmatprep.mubr.bf16.mxu1 %v2273_v45  ;;  %v2222_v32 = vld [vmem:[%s3043_s26 + $0x30] sm:$0xe] }
  0x91   : > { %1708 = vmatmul.mubr.bf16.gmra.mrb[12].mxu1 %v2787_v47  ;;  %v2788_v26 = vld [vmem:[#allocation2 + $0x1e0] ss:$8 sps:$4 sm:$0xff]   ;;  %v2223_v33 = vld [vmem:[%s3043_s26 + $0x34] sm:$0x1]  ;;  %v2224_v34 = vld [vmem:[%s3043_s26 + $0x38] sm:$0xe] }
  0x92   : > { %1733 = vmatpush1.bf16.msra.mxu1 %v2743_v51  ;;  %v463_v48 = vsel %vm3053_vm5, %v2209_v40, %v462_v41  ;;  %v2176_v51 = vld [vmem:[%s3043_s26 + $0x48] sm:$0xe]  ;;  %1750 = vmatprep.mubr.bf16.mxu1 %v2800_v3  ;;  %v2225_v35 = vld [vmem:[%s3043_s26 + $0x3c] sm:$0x1]  ;;  %v2797_v39 = vld [vmem:[#allocation2 + $0x3f0] ss:$8 sps:$4 sm:$0xff]  }
  0x93   : > { %1879 = vmatpush1.bf16.msra.mxu0 %v2746_v52  ;;  %1734 = vmatprep.subr.bf16.mxu1 %v2751_v62  ;;  %v2289_v52 = vcombine.low %v459_v46, %v463_v48  ;;  %v2185_v56 = vrot.slane %v2176_v51, 9  ;;  %v2791_v27 = vld [vmem:[#allocation2 + $0x3e0] ss:$8 sps:$4 sm:$0xff]   ;;  %v2796_v36 = vld [vmem:[#allocation2 + $0x1f4] ss:$8 sps:$4 sm:$0xff]   ;;  %v2236_v40 = vrot.slane %v2222_v32, 9 }
  0x94   : > { %1880 = vmatprep.subr.bf16.mxu0 %v2754_v63  ;;  %v2777_v63 = vld [vmem:[#allocation2 + $0x1c4] ss:$8 sps:$4 sm:$0xff]   ;;  %v515_v41 = vrot.slane %v2223_v33, 5  ;;  %v2237_v46 = vrot.slane %v2224_v34, 9  ;;  %v519_v47 = vrot.slane %v2225_v35, 5 }
  0x95   : > { %1853 = vmatprep.mubr.bf16.mxu0 %v2289_v52  ;;  %v399_v62 = vsel %vm3045_vm2, %v2185_v56, %v398_v58  ;;  %v2804_v45 = vld [vmem:[#allocation2 + $0x404] ss:$8 sps:$4 sm:$0xff]   ;;  %v264_v48 = vld [vmem:[%s3043_s26 + $0x10] sm:$0xc]  ;;  %v2801_v51 = vld [vmem:[%s3043_s26 + $0x20] ss:$8 sps:$4 sm:$0xff]  }
  0x96   : > { %1735 = vmatpush1.bf16.msra.mxu1 %v2749_v11  ;;  %v2285_v1 = vcombine.low %v395_v60, %v399_v62  ;;  %v2235_v11 = vrot.slane %v2220_v6, 9  ;;  %v267_v52 = vld [vmem:[%s3043_s26 + $0x1c] sm:$0x3]  ;;  %v516_v55 = vsel %vm3045_vm2, %v2236_v40, %v515_v41  ;;  %v520_v56 = vsel %vm3045_vm2, %v2237_v46, %v519_v47  ;;  %v2226_v60 = vld [vmem:[%s3043_s26 + $0x40] sm:$0xe] }
  0x97   : > { %1881 = vmatpush1.bf16.msra.mxu0 %v2752_v12  ;;  %1736 = vmatprep.subr.bf16.mxu1 %v2757_v14  ;;  %v511_v12 = vrot.slane %v2221_v7, 5  ;;  %v2786_v14 = vld [vmem:[#allocation2 + $0x3d4] ss:$8 sps:$4 sm:$0xff]   ;;  %v2148_v58 = vrot.slane %v264_v48, 10  ;;  %v2149_v62 = vrot.slane %v266_v50, 10  ;;  %v2238_v4 = vrot.slane %v2226_v60, 9 }
  0x98   : > { %1882 = vmatprep.subr.bf16.mxu0 %v2760_v15  ;;  %1854 = vmatmul.mubr.bf16.gmra.mrb[12].mxu0 %v2285_v1  ;;  %v2781_v15 = vld [vmem:[#allocation2 + $0x1d0] ss:$8 sps:$4 sm:$0xff]   ;;  %v2229_v1 = vld [vmem:[%s3043_s26 + $0x4c] sm:$0x1]  ;;  %v2808_v3 = vld [vmem:[%s3043_s26 + $0x20] ss:$8 sps:$4 sm:$0xff]   ;;  %v2295_v7 = vcombine.low %v516_v55, %v520_v56 }
  0x99   : > { %v2805_v6 = vld [vmem:[#allocation2 + $0x410] ss:$8 sps:$4 sm:$0xff]   ;;  %v2233_v32 = vld [vmem:[%s3043_s26 + $0x5c] sm:$0x1]  ;;  %v273_v41 = vld [vmem:[%s3043_s26 + $0x34] sm:$0x3] }
  0x9a   : > { %1737 = vmatpush1.bf16.msra.mxu1 %v2755_v17  ;;  %v508_v17 = vsel %vm3045_vm2, %v2234_v9, %v507_v10  ;;  %v527_v9 = vrot.slane %v2229_v1, 5  ;;  %v268_v10 = vld [vmem:[%s3043_s26 + $0x20] sm:$0xc]  ;;  %v2813_v33 = vld [vmem:[#allocation2 + $0x430] ss:$8 sps:$4 sm:$0xff]  }
  0x9b   : > { %1883 = vmatpush1.bf16.msra.mxu0 %v2758_v18  ;;  %1738 = vmatprep.subr.bf16.mxu1 %v2764_v23  ;;  %v512_v18 = vsel %vm3045_vm2, %v2235_v11, %v511_v12  ;;  %v263_v23 = vld [vmem:[%s3043_s26 + $0xc] sm:$0x3]  ;;  %v269_v11 = vld [vmem:[%s3043_s26 + $0x24] sm:$0x3]  ;;  %v270_v12 = vld [vmem:[%s3043_s26 + $0x28] sm:$0xc] }
  0x9c   : > { %1884 = vmatprep.subr.bf16.mxu0 %v2767_v24  ;;  %v2294_v20 = vcombine.low %v508_v17, %v512_v18  ;;  %v2790_v24 = vld [vmem:[#allocation2 + $0x1e4] ss:$8 sps:$4 sm:$0xff]   ;;  %v301_v31 = vrot.slane %v263_v23, 6  ;;  %v2810_v18 = vld [vmem:[#allocation2 + $0x420] ss:$8 sps:$4 sm:$0xff]   ;;  %v2150_v21 = vrot.slane %v268_v10, 10 }
  0x9d   : > { %v2812_v17 = vld [vmem:[#allocation2 + $0x424] ss:$8 sps:$4 sm:$0xff]   ;;  %v313_v22 = vrot.slane %v269_v11, 6  ;;  %v272_v40 = vld [vmem:[%s3043_s26 + $0x30] sm:$0xc] }
  0x9e   : > { %1739 = vmatpush1.bf16.msra.mxu1 %v2762_v37  ;;  %1896 = vmatprep.mubr.bf16.mxu0 %v2294_v20  ;;  %v2799_v37 = vld [vmem:[#allocation2 + $0x3f4] ss:$8 sps:$4 sm:$0xff]   ;;  %v2152_v48 = vrot.slane %v272_v40, 10  ;;  %v2821_v56 = vld [vmem:[#allocation2 + $0x450] ss:$8 sps:$4 sm:$0xff]  }
  0x9f   : > { %1885 = vmatpush1.bf16.msra.mxu0 %v2765_v38  ;;  %1740 = vmatprep.subr.bf16.mxu1 %v2770_v42  ;;  %v2794_v38 = vld [vmem:[#allocation2 + $0x1f0] ss:$8 sps:$4 sm:$0xff]   ;;  %v298_v42 = vsel %vm3053_vm5, %v2146_v28, %v297_v29  ;;  %v2231_v28 = vld [vmem:[%s3043_s26 + $0x54] sm:$0x1]  ;;  %v2245_v1 = vld [vmem:[%s3043_s26 + $0x2c] sm:$0x3] }
  0xa0   : > { %1886 = vmatprep.subr.bf16.mxu0 %v2773_v43  ;;  %v302_v43 = vsel %vm3053_vm5, %v2147_v30, %v301_v31  ;;  %v2232_v29 = vld [vmem:[%s3043_s26 + $0x58] sm:$0xe]  ;;  %v531_v35 = vrot.slane %v2231_v28, 5  ;;  %v2823_v55 = vld [vmem:[#allocation2 + $0x454] ss:$8 sps:$4 sm:$0xff]   ;;  %v575_v11 = vrot.slane %v2245_v1, 6 }
  0xa1   : > { %v2274_v53 = vcombine.low %v298_v42, %v302_v43  ;;  %v2816_v30 = vld [vmem:[%s3043_s26 + $0x30] ss:$8 sps:$4 sm:$0xff]   ;;  %v275_v43 = vld [vmem:[%s3043_s26 + $0x3c] sm:$0x3]  ;;  %v2255_v28 = vld [vmem:[%s3043_s26 + $0x54] sm:$0x3] }
  0xa2   : > { %1741 = vmatpush1.bf16.msra.mxu1 %v2768_v59  ;;  %v305_v59 = vrot.slane %v265_v49, 6  ;;  %v274_v42 = vld [vmem:[%s3043_s26 + $0x38] sm:$0xc]  ;;  %v2817_v49 = vld [vmem:[%s3043_s26 + $0x40] ss:$8 sps:$4 sm:$0xff]  }
  0xa3   : > { %1887 = vmatpush1.bf16.msra.mxu0 %v2771_v61  ;;  %1742 = vmatprep.subr.bf16.mxu1 %v2777_v63  ;;  %v2227_v61 = vld [vmem:[%s3043_s26 + $0x44] sm:$0x1]  ;;  %v309_v63 = vrot.slane %v267_v52, 6  ;;  %v2153_v52 = vrot.slane %v274_v42, 10 }
  0xa4   : > { %1888 = vmatprep.subr.bf16.mxu0 %v2780_v0  ;;  %v2228_v0 = vld [vmem:[%s3043_s26 + $0x48] sm:$0xe]  ;;  %v523_v5 = vrot.slane %v2227_v61, 5  ;;  %v2828_v61 = vld [vmem:[#allocation2 + $0x464] ss:$8 sps:$4 sm:$0xff]  }
  0xa6   : > { %1743 = vmatpush1.bf16.msra.mxu1 %v2775_v2  ;;  %v2807_v2 = vld [vmem:[#allocation2 + $0x414] ss:$8 sps:$4 sm:$0xff]   ;;  %v524_v19 = vsel %vm3045_vm2, %v2238_v4, %v523_v5  ;;  %v2252_v4 = vld [vmem:[%s3043_s26 + $0x48] sm:$0xc]  ;;  %v2253_v5 = vld [vmem:[%s3043_s26 + $0x4c] sm:$0x3] }
  0xa7   : > { %1889 = vmatpush1.bf16.msra.mxu0 %v2778_v8  ;;  %1744 = vmatprep.subr.bf16.mxu1 %v2783_v13  ;;  %v2239_v8 = vrot.slane %v2228_v0, 9  ;;  %v306_v13 = vsel %vm3053_vm5, %v2148_v58, %v305_v59  ;;  %v2824_v58 = vld [vmem:[%s3043_s26 + $0x40] ss:$8 sps:$4 sm:$0xff]  }
  0xa8   : > { %1890 = vmatprep.subr.bf16.mxu0 %v2786_v14  ;;  %v310_v14 = vsel %vm3053_vm5, %v2149_v62, %v309_v63  ;;  %v2242_v62 = vld [vmem:[%s3043_s26 + $0x20] sm:$0xc]  ;;  %v2243_v63 = vld [vmem:[%s3043_s26 + $0x24] sm:$0x3]  ;;  %v2244_v0 = vld [vmem:[%s3043_s26 + $0x28] sm:$0xc] }
  0xa9   : > { %v528_v20 = vsel %vm3045_vm2, %v2239_v8, %v527_v9  ;;  %v2275_v23 = vcombine.low %v306_v13, %v310_v14  ;;  %v2258_v8 = vrot.slane %v2242_v62, 10  ;;  %v571_v9 = vrot.slane %v2243_v63, 6 }
  0xaa   : > { %1745 = vmatpush1.bf16.msra.mxu1 %v2781_v15  ;;  %v271_v15 = vld [vmem:[%s3043_s26 + $0x2c] sm:$0x3]  ;;  %v2296_v31 = vcombine.low %v524_v19, %v528_v20  ;;  %v2259_v10 = vrot.slane %v2244_v0, 10 }
  0xab   : > { %1891 = vmatpush1.bf16.msra.mxu0 %v2784_v16  ;;  %1746 = vmatprep.subr.bf16.mxu1 %v2790_v24  ;;  %v2809_v16 = vld [vmem:[%s3043_s26 + $0x30] ss:$8 sps:$4 sm:$0xff]   ;;  %v2815_v24 = vld [vmem:[#allocation2 + $0x434] ss:$8 sps:$4 sm:$0xff]   ;;  %v572_v19 = vsel %vm3053_vm5, %v2258_v8, %v571_v9 }
  0xac   : > { %1892 = vmatprep.subr.bf16.mxu0 %v2793_v25  ;;  %v2151_v25 = vrot.slane %v270_v12, 10  ;;  %v2826_v12 = vld [vmem:[#allocation2 + $0x460] ss:$8 sps:$4 sm:$0xff]   ;;  %v576_v20 = vsel %vm3053_vm5, %v2259_v10, %v575_v11 }
  0xae   : > { %1747 = vmatpush1.bf16.msra.mxu1 %v2788_v26  ;;  %v317_v26 = vrot.slane %v271_v15, 6  ;;  %v2263_v15 = vrot.slane %v2252_v4, 10 }
  0xaf   : > { %1893 = vmatpush1.bf16.msra.mxu0 %v2791_v27  ;;  %1748 = vmatprep.subr.bf16.mxu1 %v2796_v36  ;;  %v2230_v27 = vld [vmem:[%s3043_s26 + $0x50] sm:$0xe]  ;;  %v2241_v36 = vrot.slane %v2232_v29, 9  ;;  %v2256_v29 = vld [vmem:[%s3043_s26 + $0x58] sm:$0xc] }
  0xb0   : > { %1894 = vmatprep.subr.bf16.mxu0 %v2799_v37  ;;  %v2240_v34 = vrot.slane %v2230_v27, 9  ;;  %v535_v37 = vrot.slane %v2233_v32, 5  ;;  %v2254_v27 = vld [vmem:[%s3043_s26 + $0x50] sm:$0xc]  ;;  %v2298_v32 = vcombine.low %v572_v19, %v576_v20  ;;  %v2265_v40 = vrot.slane %v2256_v29, 10 }
  0xb2   : > { %1749 = vmatpush1.bf16.msra.mxu1 %v2794_v38  ;;  %v314_v38 = vsel %vm3053_vm5, %v2150_v21, %v313_v22  ;;  %v532_v47 = vsel %vm3045_vm2, %v2240_v34, %v531_v35  ;;  %v536_v50 = vsel %vm3045_vm2, %v2241_v36, %v535_v37  ;;  %v2246_v21 = vld [vmem:[%s3043_s26 + $0x30] sm:$0xc]  ;;  %v2247_v22 = vld [vmem:[%s3043_s26 + $0x34] sm:$0x3] }
  0xb3   : > { %1895 = vmatpush1.bf16.msra.mxu0 %v2797_v39  ;;  %2452 = vmatprep.subr.bf16.mxu1 %v2804_v45  ;;  %v318_v39 = vsel %vm3053_vm5, %v2151_v25, %v317_v26  ;;  %v2297_v59 = vcombine.low %v532_v47, %v536_v50  ;;  %v2248_v25 = vld [vmem:[%s3043_s26 + $0x38] sm:$0xc]  ;;  %v2249_v26 = vld [vmem:[%s3043_s26 + $0x3c] sm:$0x3]  ;;  %v579_v35 = vrot.slane %v2247_v22, 6 }
  0xb4   : > { %1937 = vmatprep.subr.bf16.mxu0 %v2804_v45  ;;  %v2820_v45 = vld [vmem:[#allocation2 + $0x444] ss:$8 sps:$4 sm:$0xff]   ;;  %v2276_v46 = vcombine.low %v314_v38, %v318_v39  ;;  %v2261_v36 = vrot.slane %v2248_v25, 10  ;;  %v583_v37 = vrot.slane %v2249_v26, 6  ;;  %v2264_v38 = vrot.slane %v2254_v27, 10 }
  0xb5   : > { %1751 = vmatmul.mubr.bf16.vlgmr.msra.gmra.mrb[0].mxu1 %v2274_v53  ;;  %v325_v53 = vrot.slane %v275_v43, 6  ;;  %v595_v39 = vrot.slane %v2255_v28, 6 }
  0xb6   : > { %1897 = vmatmul.mubr.bf16.vlgmr.msra.gmra.mrb[0].mxu0 %v2801_v51  ;;  %2460 = vmatpush1.bf16.msra.mxu1 %v2802_v54  ;;  %v321_v51 = vrot.slane %v273_v41, 6  ;;  %v584_v43 = vsel %vm3053_vm5, %v2261_v36, %v583_v37 }
  0xb7   : > { %1938 = vmatpush1.bf16.msra.mxu0 %v2802_v54  ;;  %2453 = vmatprep.subr.bf16.mxu1 %v2807_v2  ;;  %v2818_v54 = vld [vmem:[#allocation2 + $0x440] ss:$8 sps:$4 sm:$0xff]   ;;  %v326_v60 = vsel %vm3053_vm5, %v2153_v52, %v325_v53  ;;  %v915_v52 = vlaneseq }
  0xb8   : > { %1939 = vmatprep.subr.bf16.mxu0 %v2807_v2  ;;  %1760 = vmatprep.mubr.bf16.mxu1 %v2808_v3  ;;  %v322_v44 = vsel %vm3053_vm5, %v2152_v48, %v321_v51  ;;  %v2250_v2 = vld [vmem:[%s3043_s26 + $0x40] sm:$0xc]  ;;  %v2251_v3 = vld [vmem:[%s3043_s26 + $0x44] sm:$0x3] }
  0xb9   : > { %1906 = vmatprep.mubr.bf16.mxu0 %v2295_v7  ;;  %v2825_v7 = vld [vmem:[%s3043_s26 + $0x50] ss:$8 sps:$4 sm:$0xff]   ;;  %v2262_v13 = vrot.slane %v2250_v2, 10  ;;  %v587_v14 = vrot.slane %v2251_v3, 6 }
  0xba   : > { %2461 = vmatpush1.bf16.msra.mxu1 %v2805_v6 }
  0xbb   : > { %1940 = vmatpush1.bf16.msra.mxu0 %v2805_v6  ;;  %2454 = vmatprep.subr.bf16.mxu1 %v2812_v17  ;;  %v2277_v6 = vcombine.low %v322_v44, %v326_v60 }
  0xbc   : > { %1941 = vmatprep.subr.bf16.mxu0 %v2812_v17  ;;  %v2831_v17 = vld [vmem:[#allocation2 + $0x474] ss:$8 sps:$4 sm:$0xff]  }
  0xbd   : > { %1761 = vmatmul.mubr.bf16.gmra.mrb[4].mxu1 %v2275_v23  ;;  %v588_v23 = vsel %vm3053_vm5, %v2262_v13, %v587_v14 }
  0xbe   : > { %1907 = vmatmul.mubr.bf16.gmra.mrb[4].mxu0 %v2809_v16  ;;  %2462 = vmatpush1.bf16.msra.mxu1 %v2810_v18  ;;  %v591_v16 = vrot.slane %v2253_v5, 6 }
  0xbf   : > { %1942 = vmatpush1.bf16.msra.mxu0 %v2810_v18  ;;  %2455 = vmatprep.subr.bf16.mxu1 %v2815_v24  ;;  %v2829_v18 = vld [vmem:[#allocation2 + $0x470] ss:$8 sps:$4 sm:$0xff]  }
  0xc0   : > { %1943 = vmatprep.subr.bf16.mxu0 %v2815_v24  ;;  %1770 = vmatprep.mubr.bf16.mxu1 %v2816_v30  ;;  %v592_v24 = vsel %vm3053_vm5, %v2263_v15, %v591_v16  ;;  %v2257_v30 = vld [vmem:[%s3043_s26 + $0x5c] sm:$0x3] }
  0xc1   : > { %1916 = vmatprep.mubr.bf16.mxu0 %v2296_v31  ;;  %v2931_v31 = vmov 0   ;;  %v2300_v34 = vcombine.low %v588_v23, %v592_v24  ;;  %v599_v41 = vrot.slane %v2257_v30, 6 }
  0xc2   : > { %2463 = vmatpush1.bf16.msra.mxu1 %v2813_v33 }
  0xc3   : > { %1944 = vmatpush1.bf16.msra.mxu0 %v2813_v33  ;;  %2456 = vmatprep.subr.bf16.mxu1 %v2820_v45  ;;  %v2260_v33 = vrot.slane %v2246_v21, 10 }
  0xc4   : > { %1945 = vmatprep.subr.bf16.mxu0 %v2820_v45  ;;  %v596_v45 = vsel %vm3053_vm5, %v2264_v38, %v595_v39 }
  0xc5   : > { %1771 = vmatmul.mubr.bf16.gmra.mrb[8].mxu1 %v2276_v46  ;;  %v580_v42 = vsel %vm3053_vm5, %v2260_v33, %v579_v35  ;;  %v600_v46 = vsel %vm3053_vm5, %v2265_v40, %v599_v41 }
  0xc6   : > { %1917 = vmatmul.mubr.bf16.gmra.mrb[8].mxu0 %v2817_v49  ;;  %2464 = vmatpush1.bf16.msra.mxu1 %v2818_v54  ;;  %v2299_v47 = vcombine.low %v580_v42, %v584_v43  ;;  %v2301_v48 = vcombine.low %v596_v45, %v600_v46 }
  0xc7   : > { %1946 = vmatpush1.bf16.msra.mxu0 %v2818_v54  ;;  %2457 = vmatprep.subr.bf16.mxu1 %v2823_v55  ;;  %v916_v54 = vshrl.u32 %v915_v52, 7 }
  0xc8   : > { %1947 = vmatprep.subr.bf16.mxu0 %v2823_v55  ;;  %1780 = vmatprep.mubr.bf16.mxu1 %v2824_v58 }
  0xc9   : > { %1926 = vmatprep.mubr.bf16.mxu0 %v2297_v59  ;;  %v917_v59 = vsub.s32 0, %v916_v54  ;;  %v921_v60 = vsub.s32 1, %v916_v54 }
  0xca   : > { %2465 = vmatpush1.bf16.msra.mxu1 %v2821_v56 }
  0xcb   : > { %1948 = vmatpush1.bf16.msra.mxu0 %v2821_v56  ;;  %2458 = vmatprep.subr.bf16.mxu1 %v2828_v61  ;;  %v3270_v62 = vrot.slane %v913_v57, %v921_v60 }
  0xcc   : > { %1949 = vmatprep.subr.bf16.mxu0 %v2828_v61  ;;  %v3268_v61 = vrot.slane %v913_v57, %v917_v59 }
  0xcd   : > { %1781 = vmatmul.mubr.bf16.gmra.mrb[12].mxu1 %v2277_v6 }
  0xce   : > { %1927 = vmatmul.mubr.bf16.gmra.mrb[12].mxu0 %v2825_v7  ;;  %2466 = vmatpush1.bf16.msra.mxu1 %v2826_v12 }
  0xcf   : > { %1950 = vmatpush1.bf16.msra.mxu0 %v2826_v12  ;;  %2459 = vmatprep.subr.bf16.mxu1 %v2831_v17 }
  0xd0   : > { %1951 = vmatprep.subr.bf16.mxu0 %v2831_v17  ;;  %1969 = vmatprep.mubr.bf16.mxu0 %v2931_v31 }
  0xd1   : > { %1989 = vmatprep.mubr.bf16.mxu1 %v2931_v31 }
  0xd2   : > { %2467 = vmatpush1.bf16.msra.mxu1 %v2829_v18 }
  0xd3   : > { %1952 = vmatpush1.bf16.msra.mxu0 %v2829_v18 }
  0xd5   : > { %1990 = vmatmul.mubr.bf16.vlgmr.msra.gmra.mrb[16].mxu1 %v2300_v34 }
  0xd6   : > { %1970 = vmatmul.mubr.bf16.vlgmr.msra.gmra.mrb[0].mxu0 %v2298_v32  ;;  %1999 = vmatprep.mubr.bf16.mxu1 %v2931_v31 }
  0xd7   : > { %1979 = vmatprep.mubr.bf16.mxu0 %v2931_v31 }
  0xdd   : > { %2000 = vmatmul.mubr.bf16.gmra.mrb[20].mxu1 %v2301_v48 }
  0xde   : > { %1980 = vmatmul.mubr.bf16.gmra.mrb[4].mxu0 %v2299_v47 }
 0x188   : > { %v1752_v49 = vpop.f32.mrb[0].mxu1 }
 0x189   : > { %v1754_v50 = vpop.f32.mrb[1].mxu1  ;;  %v2468_v31 = vadd.f32 %v1752_v49, %v3268_v61 }
 0x18a   : > { %v1756_v51 = vpop.f32.mrb[2].mxu1  ;;  %v2470_v32 = vadd.f32 %v1754_v50, %v3270_v62 }
 0x18b   : > { %v1758_v53 = vpop.f32.mrb[3].mxu1  ;;  %v2472_v35 = vadd.f32 %v1756_v51, %v3268_v61 }
 0x18c   : > { %v2474_v40 = vadd.f32 %v1758_v53, %v3270_v62 }
 0x190   : > { %v3257_v55 = vpop.f32.mrb[4].mxu1 }
 0x191   : > { %v3259_v56 = vpop.f32.mrb[5].mxu1 }
 0x192   : > { %v3261_v58 = vpop.f32.mrb[6].mxu1 }
 0x193   : > { %v3263_v44 = vpop.f32.mrb[7].mxu1 }
 0x198   : > { %v1772_v63 = vpop.f32.mrb[8].mxu1 }
 0x199   : > { %v1918_v0 = vpop.f32.mrb[8].mxu0  ;;  %v2484_v1 = vadd.f32 %v1772_v63, %v3268_v61  ;;  %v1774_v2 = vpop.f32.mrb[9].mxu1 }
 0x19a   : > { %v1920_v3 = vpop.f32.mrb[9].mxu0  ;;  %v2487_v4 = vadd.f32 %v1774_v2, %v3270_v62  ;;  %v1776_v5 = vpop.f32.mrb[10].mxu1  ;;  %v2478_v2 = vadd.f32 %v3259_v56, %v3270_v62 }
 0x19b   : > { %v1922_v6 = vpop.f32.mrb[10].mxu0  ;;  %v2485_v7 = vadd.f32 %v2484_v1, %v1918_v0  ;;  %v2490_v8 = vadd.f32 %v1776_v5, %v3268_v61  ;;  %v1778_v9 = vpop.f32.mrb[11].mxu1  ;;  %v2476_v1 = vadd.f32 %v3257_v55, %v3268_v61  ;;  %v2480_v5 = vadd.f32 %v3261_v58, %v3268_v61 }
 0x19c   : > { %v1924_v10 = vpop.f32.mrb[11].mxu0  ;;  %v2488_v11 = vadd.f32 %v2487_v4, %v1920_v3  ;;  %v2493_v12 = vadd.f32 %v1778_v9, %v3270_v62  ;;  %v2482_v55 = vadd.f32 %v3263_v44, %v3270_v62 }
 0x19d   : > { %v2491_v13 = vadd.f32 %v2490_v8, %v1922_v6 }
 0x19e   : > { %v2494_v14 = vadd.f32 %v2493_v12, %v1924_v10 }
 0x1a0   : > { %v1782_v15 = vpop.f32.mrb[12].mxu1 }
 0x1a1   : > { %v1928_v16 = vpop.f32.mrb[12].mxu0  ;;  %v2496_v17 = vadd.f32 %v1782_v15, %v3268_v61  ;;  %v1784_v18 = vpop.f32.mrb[13].mxu1 }
 0x1a2   : > { %v1930_v19 = vpop.f32.mrb[13].mxu0  ;;  %v2499_v20 = vadd.f32 %v1784_v18, %v3270_v62  ;;  %v1786_v21 = vpop.f32.mrb[14].mxu1 }
 0x1a3   : > { %v1932_v22 = vpop.f32.mrb[14].mxu0  ;;  %v2497_v23 = vadd.f32 %v2496_v17, %v1928_v16  ;;  %v2502_v24 = vadd.f32 %v1786_v21, %v3268_v61  ;;  %v1788_v25 = vpop.f32.mrb[15].mxu1 }
 0x1a4   : > { %v1934_v26 = vpop.f32.mrb[15].mxu0  ;;  %v2500_v27 = vadd.f32 %v2499_v20, %v1930_v19  ;;  %v2505_v28 = vadd.f32 %v1788_v25, %v3270_v62 }
 0x1a5   : > { %v2503_v29 = vadd.f32 %v2502_v24, %v1932_v22 }
 0x1a6   : > { %v3281_v30 = vadd.f32 %v2505_v28, %v1934_v26 }
 0x1a8   : > { %v1991_v34 = vpop.f32.mrb[16].mxu1 }
 0x1a9   : > { %v1971_v33 = vpop.f32.mrb[0].mxu0  ;;  %v2486_v37 = vadd.f32 %v2485_v7, %v1991_v34  ;;  %v1993_v39 = vpop.f32.mrb[17].mxu1 }
 0x1aa   : > { %v2469_v36 = vadd.f32 %v2468_v31, %v1971_v33  ;;  %v1973_v38 = vpop.f32.mrb[1].mxu0  ;;  %v2489_v42 = vadd.f32 %v2488_v11, %v1993_v39  ;;  %v1995_v45 = vpop.f32.mrb[18].mxu1 }
 0x1ab   : > { %v2471_v41 = vadd.f32 %v2470_v32, %v1973_v38  ;;  %v1975_v43 = vpop.f32.mrb[2].mxu0  ;;  %v2018_v47 = vmax.f32 %v2486_v37, 0.0  ;;  %v2492_v49 = vadd.f32 %v2491_v13, %v1995_v45  ;;  %v1997_v50 = vpop.f32.mrb[19].mxu1 }
 0x1ac   : > { %v2010_v46 = vmax.f32 %v2469_v36, 0.0  ;;  %v2473_v48 = vadd.f32 %v2472_v35, %v1975_v43  ;;  %v1977_v52 = vpop.f32.mrb[3].mxu0  ;;  %v2019_v59 = vmax.f32 %v2489_v42, 0.0  ;;  %v2495_v51 = vadd.f32 %v2494_v14, %v1997_v50 }
 0x1ad   : > { %v2011_v54 = vmax.f32 %v2471_v41, 0.0  ;;  %v2475_v57 = vadd.f32 %v2474_v40, %v1977_v52  ;;  %2034 = vst [vmem:[%s3289_s4 + $0x40] sm:$0xff] %v2018_v47  ;;  %v2020_v60 = vmax.f32 %v2492_v49, 0.0 }
 0x1ae   : > { %2026 = vst [vmem:[%s3289_s4] sm:$0xff] %v2010_v46  ;;  %v2012_v53 = vmax.f32 %v2473_v48, 0.0  ;;  %2035 = vst [vmem:[%s3289_s4 + $0x48] sm:$0xff] %v2019_v59  ;;  %v2021_v0 = vmax.f32 %v2495_v51, 0.0 }
 0x1af   : > { %2027 = vst [vmem:[%s3289_s4 + $0x8] sm:$0xff] %v2011_v54  ;;  %v2013_v63 = vmax.f32 %v2475_v57, 0.0  ;;  %2036 = vst [vmem:[%s3289_s4 + $0x50] sm:$0xff] %v2020_v60 }
 0x1b0   : > { %2028 = vst [vmem:[%s3289_s4 + $0x10] sm:$0xff] %v2012_v53  ;;  %2037 = vst [vmem:[%s3289_s4 + $0x58] sm:$0xff] %v2021_v0  ;;  %v2001_v4 = vpop.f32.mrb[20].mxu1 }
 0x1b1   : > { %2029 = vst [vmem:[%s3289_s4 + $0x18] sm:$0xff] %v2013_v63  ;;  %v1981_v3 = vpop.f32.mrb[4].mxu0  ;;  %v2498_v7 = vadd.f32 %v2497_v23, %v2001_v4  ;;  %v2003_v9 = vpop.f32.mrb[21].mxu1 }
 0x1b2   : > { %v2477_v6 = vadd.f32 %v2476_v1, %v1981_v3  ;;  %v1983_v8 = vpop.f32.mrb[5].mxu0  ;;  %v2501_v11 = vadd.f32 %v2500_v27, %v2003_v9  ;;  %v2005_v12 = vpop.f32.mrb[22].mxu1 }
 0x1b3   : > { %v2479_v10 = vadd.f32 %v2478_v2, %v1983_v8  ;;  %v1985_v56 = vpop.f32.mrb[6].mxu0  ;;  %v2022_v14 = vmax.f32 %v2498_v7, 0.0  ;;  %v2504_v61 = vadd.f32 %v2503_v29, %v2005_v12  ;;  %v2007_v16 = vpop.f32.mrb[23].mxu1 }
 0x1b4   : > { %v2014_v13 = vmax.f32 %v2477_v6, 0.0  ;;  %v2481_v58 = vadd.f32 %v2480_v5, %v1985_v56  ;;  %v1987_v15 = vpop.f32.mrb[7].mxu0  ;;  %v2023_v44 = vmax.f32 %v2501_v11, 0.0  ;;  %v2507_v18 = vadd.f32 %v3281_v30, %v2007_v16 }
 0x1b5   : > { %v2015_v17 = vmax.f32 %v2479_v10, 0.0  ;;  %v2483_v62 = vadd.f32 %v2482_v55, %v1987_v15  ;;  %2038 = vst [vmem:[%s3289_s4 + $0x60] sm:$0xff] %v2022_v14  ;;  %v2024_v20 = vmax.f32 %v2504_v61, 0.0 }
 0x1b6   : > { %2030 = vst [vmem:[%s3289_s4 + $0x20] sm:$0xff] %v2014_v13  ;;  %v2016_v19 = vmax.f32 %v2481_v58, 0.0  ;;  %2039 = vst [vmem:[%s3289_s4 + $0x68] sm:$0xff] %v2023_v44  ;;  %v2025_v22 = vmax.f32 %v2507_v18, 0.0 }
 0x1b7   : > { %2031 = vst [vmem:[%s3289_s4 + $0x28] sm:$0xff] %v2015_v17  ;;  %v2017_v21 = vmax.f32 %v2483_v62, 0.0  ;;  %2040 = vst [vmem:[%s3289_s4 + $0x70] sm:$0xff] %v2024_v20 }
 0x1b8   : > { %2032 = vst [vmem:[%s3289_s4 + $0x30] sm:$0xff] %v2016_v19  ;;  %2041 = vst [vmem:[%s3289_s4 + $0x78] sm:$0xff] %v2025_v22 }
 0x1b9   : > { %2033 = vst [vmem:[%s3289_s4 + $0x38] sm:$0xff] %v2017_v21 }
 0x1ba   : > { %2873 = shalt.err (!%p2870_p7)
}
 0x1bb   : > { %s2874_s20 = scalar_lea.hbm %s3315_s8, 2048  ;;  %s2878_s26 = scalar_lea.hbm %s3371_s3, 4096 }
 0x1bc   : > { %p2875_p8 = scmp.ne.s32.totalorder %s3315_s8, %s2874_s20  ;;  %p2879_p1 = scmp.lt.u32.totalorder %s3315_s8, %s3371_s3 }
 0x1bd   : > { %p2880_p0 = scmp.lt.u32.totalorder %s2878_s26, %s2874_s20  ;;  %p2882_p6 = scmp.lt.u32.totalorder %s2874_s20, %s3315_s8 }
 0x1be   : > { %p2876_p11 = pnand %p2875_p8, %p3386_p9 }
 0x1bf   : > { %p2881_p5 = por %p2880_p0, %p2879_p1 }
 0x1c0   : > { %p2877_p13 = pneg %p2876_p11 }
 0x1c1   : > { %p2883_p10 = por %p2882_p6, %p2881_p5 }
 0x1c3   : > { %p2884_p12 = pnand %p2883_p10, %p2877_p13 }
 0x1c5   : > { %2887 = shalt.err (!%p2884_p12)
}
 0x1c6   : > { %s2933_s29 = smov 256   ;;  %s2934_s30 = smov 16  }
 0x1c7   : > { %2553 = dma.vmem_to_hbm [thread:$0]  (%p3386_p9), %s3317_s6, 2048, %s3315_s8, %s3327_s9, %s2933_s29, %s2933_s29, %s2934_s30  }
 0x1c8 PF: > { %p2565_p2 = scmp.ge.s32.totalorder %s2926_s15, 2  ;;  %s2071_s4 = sand.u32 1, %s2914_s12  }
 0x1c9   : > { %p3387_p3 = scmp.ne.s32.totalorder %s3376_s23, 0  ;;  %s2072_s5 = scalar_lea.sflag [#allocation4], %s2071_s4 }
 0x1cb   : > { %p2560_p4 = pnand %p2565_p2, %p3387_p3 }
 0x1cd   : > { %2909 = dma.done.wait (!%p2560_p4), %s2072_s5, 2048  }
 0x1ce   : > { %2911 = vsyncadd (!%p2560_p4), %s2072_s5, 4294965248  ;;  %p14_p7 = scmp.ge.s32.totalorder %s2980_s18, 4   ;;  %s3388_s12 = smov %s2918_s13 }
 0x1cf   : > { %s3389_s13 = smov %s2922_s14  ;;  %s3390_s14 = smov %s2991_s21 }
 0x1d0   : > { %s3391_s15 = smov %s2980_s18  ;;  %16 = sbr.rel (!%p14_p7) target bundleno = 4 (0x4), region = 74 }
 0x1d7   :  { %2077 = vsyncpa [#allocation3], 1 }
 0x1d8   :  { %2079 = vsyncpa [#allocation3 + $0x1], 1 }
 0x1d9   :  { %2080 = vsyncpa [#allocation4], 1 }
 0x1da   :  { %2082 = vsyncpa [#allocation4 + $0x1], 1 }

</bundles_post_ra>
